<compile_context>
chip_gen: v6e
topology: v6e:2x2x1
jax: 0.10.0
libtpu: 0.0.40
codegen_flags: <defaults>
</compile_context>

<pallas_src>
import functools

import jax
import jax.numpy as jnp
from jax.experimental import pallas as pl
from jax.experimental.pallas import tpu as pltpu

EMB = 512          # InceptionResnetV1 embedding size
HID1 = 512         # fc: Linear(2*512, 512)
HID2 = 256         # fc: Linear(512, 256)
TK = 512           # K-reduction tile for the stand-in backbone projection
OUT_LANES = 128    # lane-dense output slab width


def _siamese_kernel(x_ref, we_ref, be_ref,
                    w1_ref, b1_ref, w2_ref, b2_ref,
                    w3t_ref, b3_ref,
                    o_ref, acc_ref, *, bp):
    """Grid axis 0 tiles the backbone-projection reduction (K) axis.

    x_ref   : [2*bp, TK]  bf16   rows 0..bp-1 = x1 tile, rows bp..2bp-1 = x2 tile
    we_ref  : [TK, EMB]   bf16   stand-in backbone projection tile
    acc_ref : [2*bp, EMB] f32    K accumulator (persists across grid steps)
    o_ref   : [bp, 128]   f32    lane-dense output slab (prob broadcast over lanes)
    """
    k = pl.program_id(0)

    @pl.when(k == 0)
    def _init():
        acc_ref[...] = jnp.zeros_like(acc_ref)

    # Single MXU pass shared by x1 and x2 (stacked along rows).
    acc_ref[...] += jnp.dot(x_ref[...], we_ref[...],
                            preferred_element_type=jnp.float32)

    @pl.when(k == pl.num_programs(0) - 1)
    def _finalize():
        e = acc_ref[...] + be_ref[...]                       # [2*bp, EMB] f32
        # L2 normalize (facenet contract): rsqrt on the EUP; eps on the
        # sum-of-squares (== e / max(sqrt(sumsq), 1e-12) of the original).
        sumsq = jnp.sum(e * e, axis=-1, keepdims=True)
        e = e * jax.lax.rsqrt(jnp.maximum(sumsq, 1e-24))

        e1 = e[:bp].astype(jnp.bfloat16)                     # [bp, EMB]
        e2 = e[bp:].astype(jnp.bfloat16)                     # [bp, EMB]

        # torch.cat((e1, e2), dim=1) @ W1  ==  e1 @ W1[:512] + e2 @ W1[512:]
        h = (jnp.dot(e1, w1_ref[pl.ds(0, EMB), :],
                     preferred_element_type=jnp.float32)
             + jnp.dot(e2, w1_ref[pl.ds(EMB, EMB), :],
                       preferred_element_type=jnp.float32)
             + b1_ref[...])
        h = jnp.maximum(h, 0.0)          # ReLU (Dropout(0.3) -> identity in eval)

        h2 = (jnp.dot(h.astype(jnp.bfloat16), w2_ref[...],
                      preferred_element_type=jnp.float32)
              + b2_ref[...])
        h2 = jnp.maximum(h2, 0.0)        # ReLU (Dropout(0.3) -> identity in eval)

        # Final Linear(256, 1): N=1 matmul replaced by VPU multiply + lane reduce.
        logit = jnp.sum(h2 * w3t_ref[...], axis=-1, keepdims=True) + b3_ref[...]
        prob = jax.nn.sigmoid(logit)                         # [bp, 1]

        # Lane-dense store: broadcast the single column over the 128-wide slab.
        o_ref[...] = jnp.broadcast_to(prob, o_ref.shape)


def _round_up(x, m):
    return (x + m - 1) // m * m


@jax.jit
def siamese_forward(input1, input2, params):
    """input1, input2: [B, C, H, W] float32 (NCHW, like PyTorch)."""
    B = input1.shape[0]
    x1 = input1.reshape(B, -1)           # same element order as torch .view(B, -1)
    x2 = input2.reshape(B, -1)
    K = x1.shape[1]

    Bp = _round_up(max(B, 8), 8)         # sublane-aligned per-branch batch
    Kp = _round_up(K, TK)                # reduction axis padded to the tile size
    nk = Kp // TK

    def pad_x(x):
        buf = jnp.zeros((Bp, Kp), jnp.bfloat16)
        return buf.at[:B, :K].set(x.astype(jnp.bfloat16))

    # Stack x1 / x2 along rows -> one embedding matmul against `we`.
    x_stacked = jnp.concatenate([pad_x(x1), pad_x(x2)], axis=0)   # [2*Bp, Kp]

    we = params["we"].astype(jnp.bfloat16)
    if we.shape[0] != Kp:                # zero-pad K (zeros don't change the product)
        we = jnp.zeros((Kp, EMB), jnp.bfloat16).at[:K, :].set(we)

    w1 = params["w1"].astype(jnp.bfloat16)
    w2 = params["w2"].astype(jnp.bfloat16)
    be, b1, b2 = params["be"], params["b1"], params["b2"]
    w3t, b3 = params["w3t"], params["b3"]

    flops = (2 * (2 * Bp) * Kp * EMB          # backbone projection
             + 2 * Bp * (2 * EMB) * HID1      # fc1
             + 2 * Bp * HID1 * HID2           # fc2
             + 2 * Bp * HID2)                 # fc3 (VPU reduce)
    transcendentals = 3 * Bp                  # rsqrt (both branches) + sigmoid
    bytes_accessed = (x_stacked.size * 2 + we.size * 2 + be.size * 4
                      + w1.size * 2 + b1.size * 4 + w2.size * 2 + b2.size * 4
                      + w3t.size * 4 + b3.size * 4 + Bp * OUT_LANES * 4)

    kernel = functools.partial(_siamese_kernel, bp=Bp)

    out = pl.pallas_call(
        kernel,
        out_shape=jax.ShapeDtypeStruct((Bp, OUT_LANES), jnp.float32),
        grid_spec=pltpu.PrefetchScalarGridSpec(
            num_scalar_prefetch=0,
            grid=(nk,),
            in_specs=[
                pl.BlockSpec((2 * Bp, TK), lambda k: (0, k)),      # x (stacked)
                pl.BlockSpec((TK, EMB), lambda k: (k, 0)),         # we tile
                pl.BlockSpec((1, EMB), lambda k: (0, 0)),          # be
                pl.BlockSpec((2 * EMB, HID1), lambda k: (0, 0)),   # w1
                pl.BlockSpec((1, HID1), lambda k: (0, 0)),         # b1
                pl.BlockSpec((HID1, HID2), lambda k: (0, 0)),      # w2
                pl.BlockSpec((1, HID2), lambda k: (0, 0)),         # b2
                pl.BlockSpec((1, HID2), lambda k: (0, 0)),         # w3 (transposed)
                pl.BlockSpec((1, 1), lambda k: (0, 0)),            # b3
            ],
            out_specs=pl.BlockSpec((Bp, OUT_LANES), lambda k: (0, 0)),
            scratch_shapes=[pltpu.VMEM((2 * Bp, EMB), jnp.float32)],
        ),
        compiler_params=pltpu.CompilerParams(
            dimension_semantics=("arbitrary",),     # K is a reduction axis
            vmem_limit_bytes=32 * 1024 * 1024,      # safe on v5e/v6e/v7x
        ),
        cost_estimate=pl.CostEstimate(
            flops=flops,
            transcendentals=transcendentals,
            bytes_accessed=bytes_accessed),
    )(x_stacked, we, be, w1, b1, w2, b2, w3t, b3)

    return out[:B, 0]   # drop batch/lane padding, == .squeeze(1)


def init_params(key, in_features):
    ks = jax.random.split(key, 8)
    scale = 0.02

    def w(k, shape, dtype):
        return (scale * jax.random.normal(k, shape)).astype(dtype)

    return {
        # TODO(synk): stand-in for InceptionResnetV1('vggface2'): a linear
        # projection to 512 + L2-normalize computed inside the kernel.
        "we": w(ks[0], (in_features, EMB), jnp.bfloat16),
        "be": w(ks[1], (1, EMB), jnp.float32),
        # fc head, stored [in, out]; torch nn.Linear stores [out, in].
        "w1": w(ks[2], (2 * EMB, HID1), jnp.bfloat16),
        "b1": w(ks[3], (1, HID1), jnp.float32),
        "w2": w(ks[4], (HID1, HID2), jnp.bfloat16),
        "b2": w(ks[5], (1, HID2), jnp.float32),
        # final Linear(256, 1) stored transposed as [1, 256] for the VPU reduce.
        "w3t": w(ks[6], (1, HID2), jnp.float32),
        "b3": w(ks[7], (1, 1), jnp.float32),
    }


if __name__ == "__main__":
    key = jax.random.PRNGKey(0)
    k_in1, k_in2, k_par = jax.random.split(key, 3)

    B, C, H, W = 2, 3, 16, 16
    input1 = jax.random.normal(k_in1, (B, C, H, W), dtype=jnp.float32)
    input2 = jax.random.normal(k_in2, (B, C, H, W), dtype=jnp.float32)

    params = init_params(k_par, C * H * W)

    out = siamese_forward(input1, input2, params)
    out = jax.block_until_ready(out)

    assert out.shape == (B,), out.shape
    assert bool(jnp.all(jnp.isfinite(out)))
    assert bool(jnp.all((out >= 0.0) & (out <= 1.0)))   # sigmoid range
    print("KERNEL_OK")
</pallas_src>

<mosaic_0001>
module attributes {stable_mosaic.version = 11 : i64} {
  func.func @_siamese_kernel(%arg0: i32, %arg1: memref<16x512xbf16, #tpu.memory_space<vmem>>, %arg2: memref<512x512xbf16, #tpu.memory_space<vmem>>, %arg3: memref<1x512xf32, #tpu.memory_space<vmem>>, %arg4: memref<1024x512xbf16, #tpu.memory_space<vmem>>, %arg5: memref<1x512xf32, #tpu.memory_space<vmem>>, %arg6: memref<512x256xbf16, #tpu.memory_space<vmem>>, %arg7: memref<1x256xf32, #tpu.memory_space<vmem>>, %arg8: memref<1x256xf32, #tpu.memory_space<vmem>>, %arg9: memref<1x1xf32, #tpu.memory_space<vmem>>, %arg10: memref<8x128xf32, #tpu.memory_space<vmem>>, %arg11: memref<16x512xf32, #tpu.memory_space<vmem>>) attributes {dimension_semantics = [#tpu.dimension_semantics<arbitrary>], iteration_bounds = array<i64: 2>, scalar_prefetch = 0 : i64, scratch_operands = 1 : i64, tpu.core_type = #tpu.core_type<tc>, window_params = [{transform_indices = @transform_0, window_bounds = array<i64: 16, 512>}, {transform_indices = @transform_1, window_bounds = array<i64: 512, 512>}, {pipeline_mode = #tpu.pipeline_mode<synchronous>, transform_indices = @transform_2, window_bounds = array<i64: 1, 512>}, {pipeline_mode = #tpu.pipeline_mode<synchronous>, transform_indices = @transform_3, window_bounds = array<i64: 1024, 512>}, {pipeline_mode = #tpu.pipeline_mode<synchronous>, transform_indices = @transform_4, window_bounds = array<i64: 1, 512>}, {pipeline_mode = #tpu.pipeline_mode<synchronous>, transform_indices = @transform_5, window_bounds = array<i64: 512, 256>}, {pipeline_mode = #tpu.pipeline_mode<synchronous>, transform_indices = @transform_6, window_bounds = array<i64: 1, 256>}, {pipeline_mode = #tpu.pipeline_mode<synchronous>, transform_indices = @transform_7, window_bounds = array<i64: 1, 256>}, {pipeline_mode = #tpu.pipeline_mode<synchronous>, transform_indices = @transform_8, window_bounds = array<i64: 1, 1>}, {pipeline_mode = #tpu.pipeline_mode<synchronous>, transform_indices = @transform_9, window_bounds = array<i64: 8, 128>}]} {
    %c0_i32 = arith.constant 0 : i32
    %0 = arith.cmpi eq, %arg0, %c0_i32 : i32
    %1 = arith.extui %0 : i1 to i32
    %c0_i32_0 = arith.constant 0 : i32
    %2 = arith.cmpi ne, %1, %c0_i32_0 : i32
    scf.if %2 {
      %cst_9 = arith.constant 0.000000e+00 : f32
      %12 = vector.broadcast %cst_9 : f32 to vector<16x512xf32>
      %c0_10 = arith.constant 0 : index
      %c0_11 = arith.constant 0 : index
      %13 = vector.load %arg11[%c0_10, %c0_11] : memref<16x512xf32, #tpu.memory_space<vmem>>, vector<16x512xf32>
      tpu.vector_store %arg11[%c0_10, %c0_11], %12 {strides = array<i32>} : memref<16x512xf32, #tpu.memory_space<vmem>>, vector<16x512xf32>,
    } else {
    }
    %c0 = arith.constant 0 : index
    %c0_1 = arith.constant 0 : index
    %3 = vector.load %arg11[%c0, %c0_1] : memref<16x512xf32, #tpu.memory_space<vmem>>, vector<16x512xf32>
    %c0_2 = arith.constant 0 : index
    %c0_3 = arith.constant 0 : index
    %4 = vector.load %arg1[%c0_2, %c0_3] : memref<16x512xbf16, #tpu.memory_space<vmem>>, vector<16x512xbf16>
    %c0_4 = arith.constant 0 : index
    %c0_5 = arith.constant 0 : index
    %5 = vector.load %arg2[%c0_4, %c0_5] : memref<512x512xbf16, #tpu.memory_space<vmem>>, vector<512x512xbf16>
    %cst = arith.constant dense<0.000000e+00> : vector<16x512xf32>
    %6 = tpu.matmul %4, %5, %cst {dimension_numbers = #tpu.dot_dimension_numbers<[1], [0], [0], [1], [0, 0, 1, 1], [], []>} : vector<16x512xbf16>, vector<512x512xbf16>, vector<16x512xf32> -> vector<16x512xf32>
    %7 = arith.addf %3, %6 : vector<16x512xf32>
    %c0_6 = arith.constant 0 : index
    %c0_7 = arith.constant 0 : index
    %8 = vector.load %arg11[%c0_6, %c0_7] : memref<16x512xf32, #tpu.memory_space<vmem>>, vector<16x512xf32>
    tpu.vector_store %arg11[%c0_6, %c0_7], %7 {strides = array<i32>} : memref<16x512xf32, #tpu.memory_space<vmem>>, vector<16x512xf32>,
    %c1_i32 = arith.constant 1 : i32
    %9 = arith.cmpi eq, %arg0, %c1_i32 : i32
    %10 = arith.extui %9 : i1 to i32
    %c0_i32_8 = arith.constant 0 : i32
    %11 = arith.cmpi ne, %10, %c0_i32_8 : i32
    scf.if %11 {
      %c0_9 = arith.constant 0 : index
      %c0_10 = arith.constant 0 : index
      %12 = vector.load %arg11[%c0_9, %c0_10] : memref<16x512xf32, #tpu.memory_space<vmem>>, vector<16x512xf32>
      %c0_11 = arith.constant 0 : index
      %c0_12 = arith.constant 0 : index
      %13 = vector.load %arg3[%c0_11, %c0_12] : memref<1x512xf32, #tpu.memory_space<vmem>>, vector<1x512xf32>
      %14 = vector.broadcast %13 : vector<1x512xf32> to vector<16x512xf32>
      %15 = arith.addf %12, %14 : vector<16x512xf32>
      %16 = arith.mulf %15, %15 : vector<16x512xf32>
      %cst_13 = arith.constant dense<0.000000e+00> : vector<16xf32>
      %17 = vector.multi_reduction <add>, %16, %cst_13 [1] : vector<16x512xf32> to vector<16xf32>
      %18 = vector.shape_cast %17 : vector<16xf32> to vector<16x1xf32>
      %cst_14 = arith.constant 1.000000e-24 : f32
      %19 = vector.broadcast %cst_14 : f32 to vector<16x1xf32>
      %20 = arith.maximumf %18, %19 : vector<16x1xf32>
      %21 = math.rsqrt %20 : vector<16x1xf32>
      %22 = vector.broadcast %21 : vector<16x1xf32> to vector<16x512xf32>
      %23 = arith.mulf %15, %22 : vector<16x512xf32>
      %24 = vector.extract_strided_slice %23 {offsets = [0, 0], sizes = [8, 512], strides = [1, 1]} : vector<16x512xf32> to vector<8x512xf32>
      %25 = arith.truncf %24 : vector<8x512xf32> to vector<8x512xbf16>
      %26 = vector.extract_strided_slice %23 {offsets = [8, 0], sizes = [8, 512], strides = [1, 1]} : vector<16x512xf32> to vector<8x512xf32>
      %27 = arith.truncf %26 : vector<8x512xf32> to vector<8x512xbf16>
      %c0_15 = arith.constant 0 : index
      %c0_16 = arith.constant 0 : index
      %28 = vector.load %arg4[%c0_15, %c0_16] : memref<1024x512xbf16, #tpu.memory_space<vmem>>, vector<512x512xbf16>
      %cst_17 = arith.constant dense<0.000000e+00> : vector<8x512xf32>
      %29 = tpu.matmul %25, %28, %cst_17 {dimension_numbers = #tpu.dot_dimension_numbers<[1], [0], [0], [1], [0, 0, 1, 1], [], []>} : vector<8x512xbf16>, vector<512x512xbf16>, vector<8x512xf32> -> vector<8x512xf32>
      %c512 = arith.constant 512 : index
      %c0_18 = arith.constant 0 : index
      %30 = vector.load %arg4[%c512, %c0_18] : memref<1024x512xbf16, #tpu.memory_space<vmem>>, vector<512x512xbf16>
      %cst_19 = arith.constant dense<0.000000e+00> : vector<8x512xf32>
      %31 = tpu.matmul %27, %30, %cst_19 {dimension_numbers = #tpu.dot_dimension_numbers<[1], [0], [0], [1], [0, 0, 1, 1], [], []>} : vector<8x512xbf16>, vector<512x512xbf16>, vector<8x512xf32> -> vector<8x512xf32>
      %32 = arith.addf %29, %31 : vector<8x512xf32>
      %c0_20 = arith.constant 0 : index
      %c0_21 = arith.constant 0 : index
      %33 = vector.load %arg5[%c0_20, %c0_21] : memref<1x512xf32, #tpu.memory_space<vmem>>, vector<1x512xf32>
      %34 = vector.broadcast %33 : vector<1x512xf32> to vector<8x512xf32>
      %35 = arith.addf %32, %34 : vector<8x512xf32>
      %cst_22 = arith.constant 0.000000e+00 : f32
      %36 = vector.broadcast %cst_22 : f32 to vector<8x512xf32>
      %37 = arith.maximumf %35, %36 : vector<8x512xf32>
      %38 = arith.truncf %37 : vector<8x512xf32> to vector<8x512xbf16>
      %c0_23 = arith.constant 0 : index
      %c0_24 = arith.constant 0 : index
      %39 = vector.load %arg6[%c0_23, %c0_24] : memref<512x256xbf16, #tpu.memory_space<vmem>>, vector<512x256xbf16>
      %cst_25 = arith.constant dense<0.000000e+00> : vector<8x256xf32>
      %40 = tpu.matmul %38, %39, %cst_25 {dimension_numbers = #tpu.dot_dimension_numbers<[1], [0], [0], [1], [0, 0, 1, 1], [], []>} : vector<8x512xbf16>, vector<512x256xbf16>, vector<8x256xf32> -> vector<8x256xf32>
      %c0_26 = arith.constant 0 : index
      %c0_27 = arith.constant 0 : index
      %41 = vector.load %arg7[%c0_26, %c0_27] : memref<1x256xf32, #tpu.memory_space<vmem>>, vector<1x256xf32>
      %42 = vector.broadcast %41 : vector<1x256xf32> to vector<8x256xf32>
      %43 = arith.addf %40, %42 : vector<8x256xf32>
      %cst_28 = arith.constant 0.000000e+00 : f32
      %44 = vector.broadcast %cst_28 : f32 to vector<8x256xf32>
      %45 = arith.maximumf %43, %44 : vector<8x256xf32>
      %c0_29 = arith.constant 0 : index
      %c0_30 = arith.constant 0 : index
      %46 = vector.load %arg8[%c0_29, %c0_30] : memref<1x256xf32, #tpu.memory_space<vmem>>, vector<1x256xf32>
      %47 = vector.broadcast %46 : vector<1x256xf32> to vector<8x256xf32>
      %48 = arith.mulf %45, %47 : vector<8x256xf32>
      %cst_31 = arith.constant dense<0.000000e+00> : vector<8xf32>
      %49 = vector.multi_reduction <add>, %48, %cst_31 [1] : vector<8x256xf32> to vector<8xf32>
      %50 = vector.shape_cast %49 : vector<8xf32> to vector<8x1xf32>
      %c0_32 = arith.constant 0 : index
      %c0_33 = arith.constant 0 : index
      %51 = vector.load %arg9[%c0_32, %c0_33] : memref<1x1xf32, #tpu.memory_space<vmem>>, vector<1x1xf32>
      %52 = vector.broadcast %51 : vector<1x1xf32> to vector<8x1xf32>
      %53 = arith.addf %50, %52 : vector<8x1xf32>
      %54 = arith.negf %53 : vector<8x1xf32>
      %55 = math.exp %54 : vector<8x1xf32>
      %cst_34 = arith.constant 1.000000e+00 : f32
      %56 = vector.broadcast %cst_34 : f32 to vector<8x1xf32>
      %57 = arith.addf %56, %55 : vector<8x1xf32>
      %58 = arith.divf %56, %57 : vector<8x1xf32>
      %59 = vector.shape_cast %58 : vector<8x1xf32> to vector<8x1xf32>
      %60 = vector.broadcast %59 : vector<8x1xf32> to vector<8x128xf32>
      %c0_35 = arith.constant 0 : index
      %c0_36 = arith.constant 0 : index
      %61 = vector.load %arg10[%c0_35, %c0_36] : memref<8x128xf32, #tpu.memory_space<vmem>>, vector<8x128xf32>
      tpu.vector_store %arg10[%c0_35, %c0_36], %60 {strides = array<i32>} : memref<8x128xf32, #tpu.memory_space<vmem>>, vector<8x128xf32>,
    } else {
    }
    return
  }
  func.func @transform_0(%arg0: i32) -> (i32, i32) {
    %c0_i32 = arith.constant 0 : i32
    %c0_i32_0 = arith.constant 0 : i32
    return %c0_i32, %arg0 : i32, i32
  }
  func.func @transform_1(%arg0: i32) -> (i32, i32) {
    %c0_i32 = arith.constant 0 : i32
    %c0_i32_0 = arith.constant 0 : i32
    return %arg0, %c0_i32 : i32, i32
  }
  func.func @transform_2(%arg0: i32) -> (i32, i32) {
    %c0_i32 = arith.constant 0 : i32
    %c0_i32_0 = arith.constant 0 : i32
    %c0_i32_1 = arith.constant 0 : i32
    return %c0_i32, %c0_i32_0 : i32, i32
  }
  func.func @transform_3(%arg0: i32) -> (i32, i32) {
    %c0_i32 = arith.constant 0 : i32
    %c0_i32_0 = arith.constant 0 : i32
    %c0_i32_1 = arith.constant 0 : i32
    return %c0_i32, %c0_i32_0 : i32, i32
  }
  func.func @transform_4(%arg0: i32) -> (i32, i32) {
    %c0_i32 = arith.constant 0 : i32
    %c0_i32_0 = arith.constant 0 : i32
    %c0_i32_1 = arith.constant 0 : i32
    return %c0_i32, %c0_i32_0 : i32, i32
  }
  func.func @transform_5(%arg0: i32) -> (i32, i32) {
    %c0_i32 = arith.constant 0 : i32
    %c0_i32_0 = arith.constant 0 : i32
    %c0_i32_1 = arith.constant 0 : i32
    return %c0_i32, %c0_i32_0 : i32, i32
  }
  func.func @transform_6(%arg0: i32) -> (i32, i32) {
    %c0_i32 = arith.constant 0 : i32
    %c0_i32_0 = arith.constant 0 : i32
    %c0_i32_1 = arith.constant 0 : i32
    return %c0_i32, %c0_i32_0 : i32, i32
  }
  func.func @transform_7(%arg0: i32) -> (i32, i32) {
    %c0_i32 = arith.constant 0 : i32
    %c0_i32_0 = arith.constant 0 : i32
    %c0_i32_1 = arith.constant 0 : i32
    return %c0_i32, %c0_i32_0 : i32, i32
  }
  func.func @transform_8(%arg0: i32) -> (i32, i32) {
    %c0_i32 = arith.constant 0 : i32
    %c0_i32_0 = arith.constant 0 : i32
    %c0_i32_1 = arith.constant 0 : i32
    return %c0_i32, %c0_i32_0 : i32, i32
  }
  func.func @transform_9(%arg0: i32) -> (i32, i32) {
    %c0_i32 = arith.constant 0 : i32
    %c0_i32_0 = arith.constant 0 : i32
    %c0_i32_1 = arith.constant 0 : i32
    return %c0_i32, %c0_i32_0 : i32, i32
  }
}

</mosaic_0001>

<bundles_post_ra>
// kernel: siamese_forward.1
= control target key start
LH: loop header
LB: loop body
LE: loop exit
PB: predicated region body
PF: predicated region fallthrough
CT: control target
= control target key end

     0   :  { %s6469_s0 = inlined_call_operand.vmem [shape: bf16[16,1024], index: 0, kind: input, shape index: {}]   ;;  %s6470_s1 = inlined_call_operand.vmem [shape: bf16[1024,512], index: 1, kind: input, shape index: {}]   ;;  %s6471_s2 = inlined_call_operand.vmem [shape: f32[1,512], index: 2, kind: input, shape index: {}]   ;;  %s6472_s3 = inlined_call_operand.vmem [shape: bf16[1024,512], index: 3, kind: input, shape index: {}]   ;;  %s6473_s4 = inlined_call_operand.vmem [shape: f32[1,512], index: 4, kind: input, shape index: {}]   ;;  %s6474_s5 = inlined_call_operand.vmem [shape: bf16[512,256], index: 5, kind: input, shape index: {}]   ;;  %s6475_s6 = inlined_call_operand.vmem [shape: f32[1,256], index: 6, kind: input, shape index: {}]   ;;  %s6476_s7 = inlined_call_operand.vmem [shape: f32[1,256], index: 7, kind: input, shape index: {}]   ;;  %s6477_s8 = inlined_call_operand.<no memory space> [shape: f32[1,1], index: 8, kind: input, shape index: {}]   ;;  %s6478_s9 = inlined_call_operand.vmem [shape: f32[8,128], index: 9, kind: output, shape index: {}]  }
   0x1   :  { %v14_v0 = vstv %s6477_s8 }
   0x2   :  { %15 = vst [vmem:[#allocation3] sm:$0x1] %v14_v0 }
   0x3   :  { %s5177_s11 = smov 0   ;;  %s5179_s12 = smov 0  }
   0x4   :  { %s5181_s13 = smov 0  }
   0x5 LB: > { %s5193_s8 = sadd.s32 4294967295, %s5120_s13   ;;  %s5196_s14 = sadd.s32 1, %s5120_s13   ;;  %s5120_s13 = sphi %s5181_s13, %s6481_s13   ;;  %s5116_s12 = sphi %s5179_s12, %s6480_s12   ;;  %s5112_s11 = sphi %s5177_s11, %s6479_s11  }
   0x6   : > { %s25_s15 = ssub.s32 %s5120_s13, %s5196_s14  ;;  %s28_s16 = sadd.s32 1, %s5116_s12 }
   0x7   : > { %p26_p0 = scmp.eq.s32.totalorder %s25_s15, 0  ;;  %p35_p1 = scmp.ne.s32.totalorder %s5116_s12, %s5112_s11 }
   0x8   : > { %p36_p2 = scmp.eq.s32.totalorder %s5120_s13, 0  ;;  %p3915_p4 = scmp.ge.s32.totalorder %s5120_s13, 2 }
   0x9   : > { %s5205_s17 = scalar_select %p26_p0, %s5116_s12, %s28_s16  }
   0xa   : > { %p37_p3 = por %p36_p2, %p35_p1  ;;  %276 = sbr.rel (%p3915_p4) target bundleno = 21 (0x15), region = 44 }
   0xf   : > { %279 = sbr.rel (!%p37_p3) target bundleno = 21 (0x15), region = 48  ;;  %s281_s18 = sand.u32 (%p37_p3), 1, %s5116_s12  }
  0x10   : > { %s4382_s19 = sshll.u32 (%p37_p3), %s5120_s13, 4  ;;  %s3916_s20 = sshll.u32 (%p37_p3), %s281_s18, 5 }
  0x11   : > { %s286_s23 = scalar_lea.vmem (%p37_p3), %s6469_s0, %s4382_s19  ;;  %s283_s24 = scalar_lea.vmem (%p37_p3), [#allocation4], %s3916_s20 }
  0x12   : > { %v299_v1 = vld [vmem:[%s286_s23] sm:$0xff] (%p37_p3)  ;;  %v301_v2 = vld [vmem:[%s286_s23 + $0x8] sm:$0xff] (%p37_p3) }
  0x13   : > { %v303_v3 = vld [vmem:[%s286_s23 + $0x20] sm:$0xff] (%p37_p3)  ;;  %300 = vst [vmem:[%s283_s24] sm:$0xff] (%p37_p3), %v299_v1  ;;  %302 = vst [vmem:[%s283_s24 + $0x8] sm:$0xff] (%p37_p3), %v301_v2  ;;  %v305_v4 = vld [vmem:[%s286_s23 + $0x28] sm:$0xff] (%p37_p3) }
  0x14   : > { %304 = vst [vmem:[%s283_s24 + $0x10] sm:$0xff] %v303_v3  ;;  %306 = vst [vmem:[%s283_s24 + $0x18] sm:$0xff] %v305_v4 }
  0x15 PF: > { %p3919_p5 = scmp.ge.s32.totalorder %s5120_s13, 1  ;;  %p321_p6 = scmp.lt.s32.totalorder %s5120_s13, 3 }
  0x17   : > { %p322_p7 = pnand %p3919_p5, %p321_p6 }
  0x18   : > { %s328_s25 = sand.u32 (!%p322_p7), 1, %s5112_s11   ;;  %s3921_s26 = sshll.u32 (!%p322_p7), %s5193_s8, 6 }
  0x19   : > { %325 = sbr.rel (%p322_p7) target bundleno = 1449 (0x5a9), region = 75  ;;  %s3920_s27 = sshll.u32 (!%p322_p7), %s328_s25, 5 }
  0x1a   : > { %p366_p8 = scmp.lt.s32.totalorder (!%p322_p7), %s3921_s26, 127  ;;  %s5222_s15 = scalar_lea.vmem (!%p322_p7), [#allocation4], %s3920_s27 }
  0x1b   : > { %p3924_p9 = scmp.ne.s32.totalorder (!%p322_p7), %s5193_s8, 0 }
  0x1e   : > { %s6483_s26 = smov (!%p366_p8, %s3921_s26), 127  ;;  %375 = sbr.rel (%p3924_p9) target bundleno = 40 (0x28), region = 83 }
  0x1f   : > { %s4383_s28 = sshll.u32 %s6483_s26, 4 }
  0x20   : > { %s5220_s10 = scalar_lea.vmem %s6470_s1, %s4383_s28 }
  0x23   : > { %v5122_v5 = vmov 0.0  }
  0x24   : > { %376 = vst [vmem:[#allocation2 + $0x30] sm:$0xff] %v5122_v5  ;;  %377 = vst [vmem:[#allocation2] sm:$0xff] %v5122_v5 }
  0x25   : > { %378 = vst [vmem:[#allocation2 + $0x18] sm:$0xff] %v5122_v5  ;;  %379 = vst [vmem:[#allocation2 + $0x10] sm:$0xff] %v5122_v5 }
  0x26   : > { %380 = vst [vmem:[#allocation2 + $0x8] sm:$0xff] %v5122_v5  ;;  %381 = vst [vmem:[#allocation2 + $0x20] sm:$0xff] %v5122_v5 }
  0x27   : > { %382 = vst [vmem:[#allocation2 + $0x28] sm:$0xff] %v5122_v5  ;;  %383 = vst [vmem:[#allocation2 + $0x38] sm:$0xff] %v5122_v5 }
  0x28 PF: > { %v4410_v6 = vld [vmem:[%s5220_s10 + $0xe4] ss:$16 sps:$4 sm:$0xff]   ;;  %v4414_v8 = vld [vmem:[%s5220_s10 + $0xe0] ss:$16 sps:$4 sm:$0xff]   ;;  %p4057_p10 = scmp.ne.s32.totalorder %s5193_s8, 1 }
  0x29   : > { %v4412_v7 = vld [vmem:[%s5220_s10 + $0x2e4] ss:$16 sps:$4 sm:$0xff]   ;;  %1184 = vmatprep.subr.bf16.mxu0 %v4410_v6  ;;  %v4415_v9 = vld [vmem:[%s5220_s10 + $0x2e0] ss:$16 sps:$4 sm:$0xff]  }
  0x2a   : > { %1227 = vmatprep.subr.bf16.mxu1 %v4412_v7  ;;  %v4416_v10 = vld [vmem:[%s5220_s10 + $0xc4] ss:$16 sps:$4 sm:$0xff]   ;;  %1185 = vmatpush1.bf16.msra.mxu0 %v4414_v8  ;;  %v4420_v12 = vld [vmem:[%s5220_s10 + $0xc0] ss:$16 sps:$4 sm:$0xff]   ;;  %v4514_v8 = vld [vmem:[%s5220_s10 + $0xec] ss:$16 sps:$4 sm:$0xff]  }
  0x2b   : > { %1228 = vmatpush1.bf16.msra.mxu1 %v4415_v9  ;;  %v4418_v11 = vld [vmem:[%s5220_s10 + $0x2c4] ss:$16 sps:$4 sm:$0xff]   ;;  %1186 = vmatprep.subr.bf16.mxu0 %v4416_v10  ;;  %v4421_v13 = vld [vmem:[%s5220_s10 + $0x2c0] ss:$16 sps:$4 sm:$0xff]   ;;  %v4517_v9 = vld [vmem:[%s5220_s10 + $0x2ec] ss:$16 sps:$4 sm:$0xff]  }
  0x2c   : > { %1229 = vmatprep.subr.bf16.mxu1 %v4418_v11  ;;  %v4422_v14 = vld [vmem:[%s5220_s10 + $0xa4] ss:$16 sps:$4 sm:$0xff]   ;;  %v4426_v16 = vld [vmem:[%s5220_s10 + $0xa0] ss:$16 sps:$4 sm:$0xff]   ;;  %v5297_v11 = vld [vmem:[%s5222_s15 + $0x8] ss:$16 sps:$4 sm:$0xff]  }
  0x2d   : > { %v4424_v15 = vld [vmem:[%s5220_s10 + $0x2a4] ss:$16 sps:$4 sm:$0xff]   ;;  %v4427_v17 = vld [vmem:[%s5220_s10 + $0x2a0] ss:$16 sps:$4 sm:$0xff]  }
  0x2e   : > { %1187 = vmatpush1.bf16.msra.mxu0 %v4420_v12  ;;  %v4428_v18 = vld [vmem:[%s5220_s10 + $0x84] ss:$16 sps:$4 sm:$0xff]   ;;  %v4432_v20 = vld [vmem:[%s5220_s10 + $0x80] ss:$16 sps:$4 sm:$0xff]   ;;  %v4512_v12 = vld [vmem:[%s5220_s10 + $0xe8] ss:$16 sps:$4 sm:$0xff]  }
  0x2f   : > { %1230 = vmatpush1.bf16.msra.mxu1 %v4421_v13  ;;  %1188 = vmatprep.subr.bf16.mxu0 %v4422_v14  ;;  %v4430_v19 = vld [vmem:[%s5220_s10 + $0x284] ss:$16 sps:$4 sm:$0xff]   ;;  %v4433_v21 = vld [vmem:[%s5220_s10 + $0x280] ss:$16 sps:$4 sm:$0xff]   ;;  %v4515_v13 = vld [vmem:[%s5220_s10 + $0x2e8] ss:$16 sps:$4 sm:$0xff]  }
  0x30   : > { %1231 = vmatprep.subr.bf16.mxu1 %v4424_v15  ;;  %v4434_v22 = vld [vmem:[%s5220_s10 + $0x64] ss:$16 sps:$4 sm:$0xff]   ;;  %v4438_v24 = vld [vmem:[%s5220_s10 + $0x60] ss:$16 sps:$4 sm:$0xff]   ;;  %v4520_v14 = vld [vmem:[%s5220_s10 + $0xcc] ss:$16 sps:$4 sm:$0xff]  }
  0x31   : > { %v4436_v23 = vld [vmem:[%s5220_s10 + $0x264] ss:$16 sps:$4 sm:$0xff]   ;;  %v4439_v25 = vld [vmem:[%s5220_s10 + $0x260] ss:$16 sps:$4 sm:$0xff]   ;;  %v4523_v15 = vld [vmem:[%s5220_s10 + $0x2cc] ss:$16 sps:$4 sm:$0xff]  }
  0x32   : > { %1189 = vmatpush1.bf16.msra.mxu0 %v4426_v16  ;;  %v4440_v26 = vld [vmem:[%s5220_s10 + $0x44] ss:$16 sps:$4 sm:$0xff]   ;;  %v4444_v28 = vld [vmem:[%s5220_s10 + $0x40] ss:$16 sps:$4 sm:$0xff]   ;;  %v4518_v16 = vld [vmem:[%s5220_s10 + $0xc8] ss:$16 sps:$4 sm:$0xff]  }
  0x33   : > { %1232 = vmatpush1.bf16.msra.mxu1 %v4427_v17  ;;  %1190 = vmatprep.subr.bf16.mxu0 %v4428_v18  ;;  %v4442_v27 = vld [vmem:[%s5220_s10 + $0x244] ss:$16 sps:$4 sm:$0xff]   ;;  %v4445_v29 = vld [vmem:[%s5220_s10 + $0x240] ss:$16 sps:$4 sm:$0xff]   ;;  %v4521_v17 = vld [vmem:[%s5220_s10 + $0x2c8] ss:$16 sps:$4 sm:$0xff]  }
  0x34   : > { %1233 = vmatprep.subr.bf16.mxu1 %v4430_v19  ;;  %v4446_v30 = vld [vmem:[%s5220_s10 + $0x24] ss:$16 sps:$4 sm:$0xff]   ;;  %v4450_v32 = vld [vmem:[%s5220_s10 + $0x20] ss:$16 sps:$4 sm:$0xff]   ;;  %v4526_v18 = vld [vmem:[%s5220_s10 + $0xac] ss:$16 sps:$4 sm:$0xff]  }
  0x35   : > { %v4448_v31 = vld [vmem:[%s5220_s10 + $0x224] ss:$16 sps:$4 sm:$0xff]   ;;  %v4451_v33 = vld [vmem:[%s5220_s10 + $0x220] ss:$16 sps:$4 sm:$0xff]   ;;  %v4529_v19 = vld [vmem:[%s5220_s10 + $0x2ac] ss:$16 sps:$4 sm:$0xff]  }
  0x36   : > { %1191 = vmatpush1.bf16.msra.mxu0 %v4432_v20  ;;  %v4452_v34 = vld [vmem:[%s5220_s10 + $0x4] ss:$16 sps:$4 sm:$0xff]   ;;  %v4456_v36 = vld [vmem:[%s5220_s10] ss:$16 sps:$4 sm:$0xff]   ;;  %v4524_v20 = vld [vmem:[%s5220_s10 + $0xa8] ss:$16 sps:$4 sm:$0xff]  }
  0x37   : > { %1234 = vmatpush1.bf16.msra.mxu1 %v4433_v21  ;;  %1192 = vmatprep.subr.bf16.mxu0 %v4434_v22  ;;  %v4454_v35 = vld [vmem:[%s5220_s10 + $0x204] ss:$16 sps:$4 sm:$0xff]   ;;  %v4457_v37 = vld [vmem:[%s5220_s10 + $0x200] ss:$16 sps:$4 sm:$0xff]   ;;  %v4527_v21 = vld [vmem:[%s5220_s10 + $0x2a8] ss:$16 sps:$4 sm:$0xff]  }
  0x38   : > { %1235 = vmatprep.subr.bf16.mxu1 %v4436_v23  ;;  %v4458_v38 = vld [vmem:[%s5220_s10 + $0x1e4] ss:$16 sps:$4 sm:$0xff]   ;;  %v4462_v40 = vld [vmem:[%s5220_s10 + $0x1e0] ss:$16 sps:$4 sm:$0xff]   ;;  %v4532_v22 = vld [vmem:[%s5220_s10 + $0x8c] ss:$16 sps:$4 sm:$0xff]  }
  0x39   : > { %v4460_v39 = vld [vmem:[%s5220_s10 + $0x3e4] ss:$16 sps:$4 sm:$0xff]   ;;  %v4463_v41 = vld [vmem:[%s5220_s10 + $0x3e0] ss:$16 sps:$4 sm:$0xff]   ;;  %v4535_v23 = vld [vmem:[%s5220_s10 + $0x28c] ss:$16 sps:$4 sm:$0xff]  }
  0x3a   : > { %1193 = vmatpush1.bf16.msra.mxu0 %v4438_v24  ;;  %v4464_v42 = vld [vmem:[%s5220_s10 + $0x1c4] ss:$16 sps:$4 sm:$0xff]   ;;  %v4468_v44 = vld [vmem:[%s5220_s10 + $0x1c0] ss:$16 sps:$4 sm:$0xff]   ;;  %v4530_v24 = vld [vmem:[%s5220_s10 + $0x88] ss:$16 sps:$4 sm:$0xff]  }
  0x3b   : > { %1236 = vmatpush1.bf16.msra.mxu1 %v4439_v25  ;;  %1194 = vmatprep.subr.bf16.mxu0 %v4440_v26  ;;  %v4466_v43 = vld [vmem:[%s5220_s10 + $0x3c4] ss:$16 sps:$4 sm:$0xff]   ;;  %v4469_v45 = vld [vmem:[%s5220_s10 + $0x3c0] ss:$16 sps:$4 sm:$0xff]   ;;  %v4533_v25 = vld [vmem:[%s5220_s10 + $0x288] ss:$16 sps:$4 sm:$0xff]  }
  0x3c   : > { %1237 = vmatprep.subr.bf16.mxu1 %v4442_v27  ;;  %v4470_v46 = vld [vmem:[%s5220_s10 + $0x1a4] ss:$16 sps:$4 sm:$0xff]   ;;  %v4474_v48 = vld [vmem:[%s5220_s10 + $0x1a0] ss:$16 sps:$4 sm:$0xff]   ;;  %v4538_v26 = vld [vmem:[%s5220_s10 + $0x6c] ss:$16 sps:$4 sm:$0xff]  }
  0x3d   : > { %v4472_v47 = vld [vmem:[%s5220_s10 + $0x3a4] ss:$16 sps:$4 sm:$0xff]   ;;  %v4475_v49 = vld [vmem:[%s5220_s10 + $0x3a0] ss:$16 sps:$4 sm:$0xff]   ;;  %v4541_v27 = vld [vmem:[%s5220_s10 + $0x26c] ss:$16 sps:$4 sm:$0xff]  }
  0x3e   : > { %1195 = vmatpush1.bf16.msra.mxu0 %v4444_v28  ;;  %v4476_v50 = vld [vmem:[%s5220_s10 + $0x184] ss:$16 sps:$4 sm:$0xff]   ;;  %v4480_v52 = vld [vmem:[%s5220_s10 + $0x180] ss:$16 sps:$4 sm:$0xff]   ;;  %v4536_v28 = vld [vmem:[%s5220_s10 + $0x68] ss:$16 sps:$4 sm:$0xff]  }
  0x3f   : > { %1238 = vmatpush1.bf16.msra.mxu1 %v4445_v29  ;;  %1196 = vmatprep.subr.bf16.mxu0 %v4446_v30  ;;  %v4478_v51 = vld [vmem:[%s5220_s10 + $0x384] ss:$16 sps:$4 sm:$0xff]   ;;  %v4481_v53 = vld [vmem:[%s5220_s10 + $0x380] ss:$16 sps:$4 sm:$0xff]   ;;  %v4539_v29 = vld [vmem:[%s5220_s10 + $0x268] ss:$16 sps:$4 sm:$0xff]  }
  0x40   : > { %1239 = vmatprep.subr.bf16.mxu1 %v4448_v31  ;;  %v4482_v54 = vld [vmem:[%s5220_s10 + $0x164] ss:$16 sps:$4 sm:$0xff]   ;;  %v4511_v57 = vld [vmem:[%s5222_s15 + $0xc] ss:$16 sps:$4 sm:$0xff]  }
  0x41   : > { %v4508_v55 = vld [vmem:[%s5222_s15 + $0x4] ss:$16 sps:$4 sm:$0xff]   ;;  %v4486_v58 = vld [vmem:[%s5220_s10 + $0x160] ss:$16 sps:$4 sm:$0xff]   ;;  %1259 = vmatprep.mubr.bf16.mxu1 %v4511_v57  ;;  %v4544_v30 = vld [vmem:[%s5220_s10 + $0x4c] ss:$16 sps:$4 sm:$0xff]  }
  0x42   : > { %1197 = vmatpush1.bf16.msra.mxu0 %v4450_v32  ;;  %v4484_v56 = vld [vmem:[%s5220_s10 + $0x364] ss:$16 sps:$4 sm:$0xff]   ;;  %1216 = vmatprep.mubr.bf16.mxu0 %v4508_v55  ;;  %v4487_v59 = vld [vmem:[%s5220_s10 + $0x360] ss:$16 sps:$4 sm:$0xff]   ;;  %v4547_v31 = vld [vmem:[%s5220_s10 + $0x24c] ss:$16 sps:$4 sm:$0xff]  }
  0x43   : > { %1240 = vmatpush1.bf16.msra.mxu1 %v4451_v33  ;;  %1198 = vmatprep.subr.bf16.mxu0 %v4452_v34  ;;  %v4488_v60 = vld [vmem:[%s5220_s10 + $0x144] ss:$16 sps:$4 sm:$0xff]   ;;  %v4492_v62 = vld [vmem:[%s5220_s10 + $0x140] ss:$16 sps:$4 sm:$0xff]   ;;  %v4542_v32 = vld [vmem:[%s5220_s10 + $0x48] ss:$16 sps:$4 sm:$0xff]  }
  0x44   : > { %1241 = vmatprep.subr.bf16.mxu1 %v4454_v35  ;;  %v4490_v61 = vld [vmem:[%s5220_s10 + $0x344] ss:$16 sps:$4 sm:$0xff]   ;;  %v4493_v63 = vld [vmem:[%s5220_s10 + $0x340] ss:$16 sps:$4 sm:$0xff]   ;;  %v4545_v33 = vld [vmem:[%s5220_s10 + $0x248] ss:$16 sps:$4 sm:$0xff]  }
  0x45   : > { %v4494_v0 = vld [vmem:[%s5220_s10 + $0x124] ss:$16 sps:$4 sm:$0xff]   ;;  %v4498_v2 = vld [vmem:[%s5220_s10 + $0x120] ss:$16 sps:$4 sm:$0xff]   ;;  %v4550_v34 = vld [vmem:[%s5220_s10 + $0x2c] ss:$16 sps:$4 sm:$0xff]  }
  0x46   : > { %1199 = vmatpush1.bf16.msra.mxu0 %v4456_v36  ;;  %v4496_v1 = vld [vmem:[%s5220_s10 + $0x324] ss:$16 sps:$4 sm:$0xff]   ;;  %v4499_v3 = vld [vmem:[%s5220_s10 + $0x320] ss:$16 sps:$4 sm:$0xff]   ;;  %v4553_v35 = vld [vmem:[%s5220_s10 + $0x22c] ss:$16 sps:$4 sm:$0xff]  }
  0x47   : > { %1242 = vmatpush1.bf16.msra.mxu1 %v4457_v37  ;;  %1200 = vmatprep.subr.bf16.mxu0 %v4458_v38  ;;  %v4500_v4 = vld [vmem:[%s5220_s10 + $0x104] ss:$16 sps:$4 sm:$0xff]   ;;  %v4504_v6 = vld [vmem:[%s5220_s10 + $0x100] ss:$16 sps:$4 sm:$0xff]   ;;  %v4548_v36 = vld [vmem:[%s5220_s10 + $0x28] ss:$16 sps:$4 sm:$0xff]  }
  0x48   : > { %1243 = vmatprep.subr.bf16.mxu1 %v4460_v39  ;;  %v4502_v5 = vld [vmem:[%s5220_s10 + $0x304] ss:$16 sps:$4 sm:$0xff]   ;;  %v4505_v7 = vld [vmem:[%s5220_s10 + $0x300] ss:$16 sps:$4 sm:$0xff]   ;;  %v4551_v37 = vld [vmem:[%s5220_s10 + $0x228] ss:$16 sps:$4 sm:$0xff]  }
  0x49   : > { %v5294_v10 = vld [vmem:[%s5222_s15] ss:$16 sps:$4 sm:$0xff]   ;;  %v4556_v38 = vld [vmem:[%s5220_s10 + $0xc] ss:$16 sps:$4 sm:$0xff]  }
  0x4a   : > { %1201 = vmatpush2.bf16.msra.mxu0 %v4462_v40  ;;  %v4559_v39 = vld [vmem:[%s5220_s10 + $0x20c] ss:$16 sps:$4 sm:$0xff]   ;;  %v4554_v40 = vld [vmem:[%s5220_s10 + $0x8] ss:$16 sps:$4 sm:$0xff]  }
  0x4b   : > { %1244 = vmatpush2.bf16.msra.mxu1 %v4463_v41  ;;  %1202 = vmatprep.subr.bf16.mxu0 %v4464_v42  ;;  %v4557_v41 = vld [vmem:[%s5220_s10 + $0x208] ss:$16 sps:$4 sm:$0xff]   ;;  %v4562_v42 = vld [vmem:[%s5220_s10 + $0x1ec] ss:$16 sps:$4 sm:$0xff]  }
  0x4c   : > { %1245 = vmatprep.subr.bf16.mxu1 %v4466_v43  ;;  %v4565_v43 = vld [vmem:[%s5220_s10 + $0x3ec] ss:$16 sps:$4 sm:$0xff]  }
  0x4e   : > { %1203 = vmatpush2.bf16.msra.mxu0 %v4468_v44  ;;  %v4560_v44 = vld [vmem:[%s5220_s10 + $0x1e8] ss:$16 sps:$4 sm:$0xff]  }
  0x4f   : > { %1246 = vmatpush2.bf16.msra.mxu1 %v4469_v45  ;;  %1204 = vmatprep.subr.bf16.mxu0 %v4470_v46  ;;  %v4563_v45 = vld [vmem:[%s5220_s10 + $0x3e8] ss:$16 sps:$4 sm:$0xff]   ;;  %v4568_v46 = vld [vmem:[%s5220_s10 + $0x1cc] ss:$16 sps:$4 sm:$0xff]  }
  0x50   : > { %1247 = vmatprep.subr.bf16.mxu1 %v4472_v47  ;;  %v4571_v47 = vld [vmem:[%s5220_s10 + $0x3cc] ss:$16 sps:$4 sm:$0xff]  }
  0x52   : > { %1205 = vmatpush2.bf16.msra.mxu0 %v4474_v48  ;;  %v4566_v48 = vld [vmem:[%s5220_s10 + $0x1c8] ss:$16 sps:$4 sm:$0xff]  }
  0x53   : > { %1248 = vmatpush2.bf16.msra.mxu1 %v4475_v49  ;;  %1206 = vmatprep.subr.bf16.mxu0 %v4476_v50  ;;  %v4569_v49 = vld [vmem:[%s5220_s10 + $0x3c8] ss:$16 sps:$4 sm:$0xff]   ;;  %v4574_v50 = vld [vmem:[%s5220_s10 + $0x1ac] ss:$16 sps:$4 sm:$0xff]  }
  0x54   : > { %1249 = vmatprep.subr.bf16.mxu1 %v4478_v51  ;;  %v4577_v51 = vld [vmem:[%s5220_s10 + $0x3ac] ss:$16 sps:$4 sm:$0xff]  }
  0x56   : > { %1207 = vmatpush2.bf16.msra.mxu0 %v4480_v52  ;;  %v4572_v52 = vld [vmem:[%s5220_s10 + $0x1a8] ss:$16 sps:$4 sm:$0xff]  }
  0x57   : > { %1250 = vmatpush2.bf16.msra.mxu1 %v4481_v53  ;;  %1208 = vmatprep.subr.bf16.mxu0 %v4482_v54  ;;  %v4575_v53 = vld [vmem:[%s5220_s10 + $0x3a8] ss:$16 sps:$4 sm:$0xff]   ;;  %v4580_v54 = vld [vmem:[%s5220_s10 + $0x18c] ss:$16 sps:$4 sm:$0xff]  }
  0x58   : > { %1251 = vmatprep.subr.bf16.mxu1 %v4484_v56  ;;  %v4578_v56 = vld [vmem:[%s5220_s10 + $0x188] ss:$16 sps:$4 sm:$0xff]  }
  0x5a   : > { %1209 = vmatpush2.bf16.msra.mxu0 %v4486_v58  ;;  %v4586_v58 = vld [vmem:[%s5220_s10 + $0x16c] ss:$16 sps:$4 sm:$0xff]  }
  0x5b   : > { %1252 = vmatpush2.bf16.msra.mxu1 %v4487_v59  ;;  %1210 = vmatprep.subr.bf16.mxu0 %v4488_v60  ;;  %v4589_v59 = vld [vmem:[%s5220_s10 + $0x36c] ss:$16 sps:$4 sm:$0xff]   ;;  %v4584_v60 = vld [vmem:[%s5220_s10 + $0x168] ss:$16 sps:$4 sm:$0xff]  }
  0x5c   : > { %1253 = vmatprep.subr.bf16.mxu1 %v4490_v61  ;;  %v4587_v61 = vld [vmem:[%s5220_s10 + $0x368] ss:$16 sps:$4 sm:$0xff]  }
  0x5e   : > { %1211 = vmatpush2.bf16.msra.mxu0 %v4492_v62  ;;  %v4592_v62 = vld [vmem:[%s5220_s10 + $0x14c] ss:$16 sps:$4 sm:$0xff]  }
  0x5f   : > { %1254 = vmatpush2.bf16.msra.mxu1 %v4493_v63  ;;  %1212 = vmatprep.subr.bf16.mxu0 %v4494_v0  ;;  %v4595_v63 = vld [vmem:[%s5220_s10 + $0x34c] ss:$16 sps:$4 sm:$0xff]   ;;  %v4590_v0 = vld [vmem:[%s5220_s10 + $0x148] ss:$16 sps:$4 sm:$0xff]  }
  0x60   : > { %1255 = vmatprep.subr.bf16.mxu1 %v4496_v1  ;;  %v4593_v1 = vld [vmem:[%s5220_s10 + $0x348] ss:$16 sps:$4 sm:$0xff]  }
  0x62   : > { %1213 = vmatpush2.bf16.msra.mxu0 %v4498_v2  ;;  %v4598_v2 = vld [vmem:[%s5220_s10 + $0x12c] ss:$16 sps:$4 sm:$0xff]  }
  0x63   : > { %1256 = vmatpush2.bf16.msra.mxu1 %v4499_v3  ;;  %1214 = vmatprep.subr.bf16.mxu0 %v4500_v4  ;;  %v4601_v3 = vld [vmem:[%s5220_s10 + $0x32c] ss:$16 sps:$4 sm:$0xff]   ;;  %v4596_v4 = vld [vmem:[%s5220_s10 + $0x128] ss:$16 sps:$4 sm:$0xff]  }
  0x64   : > { %1257 = vmatprep.subr.bf16.mxu1 %v4502_v5  ;;  %v4599_v5 = vld [vmem:[%s5220_s10 + $0x328] ss:$16 sps:$4 sm:$0xff]  }
  0x66   : > { %1215 = vmatpush2.bf16.msra.mxu0 %v4504_v6  ;;  %v4604_v6 = vld [vmem:[%s5220_s10 + $0x10c] ss:$16 sps:$4 sm:$0xff]  }
  0x67   : > { %1258 = vmatpush2.bf16.msra.mxu1 %v4505_v7  ;;  %1270 = vmatprep.subr.bf16.mxu0 %v4514_v8  ;;  %v4607_v7 = vld [vmem:[%s5220_s10 + $0x30c] ss:$16 sps:$4 sm:$0xff]   ;;  %v4602_v8 = vld [vmem:[%s5220_s10 + $0x108] ss:$16 sps:$4 sm:$0xff]  }
  0x68   : > { %1313 = vmatprep.subr.bf16.mxu1 %v4517_v9  ;;  %v4605_v9 = vld [vmem:[%s5220_s10 + $0x308] ss:$16 sps:$4 sm:$0xff]  }
  0x69   : > { %1217 = vmatmul.mubr.bf16.vlgmr.msra.gmra.mxu0 %v5294_v10 }
  0x6a   : > { %1260 = vmatmul.mubr.bf16.vlgmr.msra.gmra.mxu1 %v5297_v11  ;;  %1271 = vmatpush1.bf16.msra.mxu0 %v4512_v12 }
  0x6b   : > { %1314 = vmatpush1.bf16.msra.mxu1 %v4515_v13  ;;  %1272 = vmatprep.subr.bf16.mxu0 %v4520_v14  ;;  %v384_v13 = vld [vmem:[#allocation2 + $0x30] sm:$0xff] }
  0x6c   : > { %1315 = vmatprep.subr.bf16.mxu1 %v4523_v15  ;;  %1302 = vmatprep.mubr.bf16.mxu0 %v4508_v55  ;;  %v4583_v55 = vld [vmem:[%s5220_s10 + $0x38c] ss:$16 sps:$4 sm:$0xff]  }
  0x6d   : > { %1345 = vmatprep.mubr.bf16.mxu1 %v4511_v57  ;;  %v4581_v57 = vld [vmem:[%s5220_s10 + $0x388] ss:$16 sps:$4 sm:$0xff]  }
  0x6e   : > { %1273 = vmatpush1.bf16.msra.mxu0 %v4518_v16 }
  0x6f   : > { %1316 = vmatpush1.bf16.msra.mxu1 %v4521_v17  ;;  %1274 = vmatprep.subr.bf16.mxu0 %v4526_v18  ;;  %v385_v17 = vld [vmem:[#allocation2] sm:$0xff] }
  0x70   : > { %1317 = vmatprep.subr.bf16.mxu1 %v4529_v19 }
  0x72   : > { %1275 = vmatpush1.bf16.msra.mxu0 %v4524_v20 }
  0x73   : > { %1318 = vmatpush1.bf16.msra.mxu1 %v4527_v21  ;;  %1276 = vmatprep.subr.bf16.mxu0 %v4532_v22  ;;  %v388_v22 = vld [vmem:[#allocation2 + $0x8] sm:$0xff] }
  0x74   : > { %1319 = vmatprep.subr.bf16.mxu1 %v4535_v23 }
  0x76   : > { %1277 = vmatpush1.bf16.msra.mxu0 %v4530_v24 }
  0x77   : > { %1320 = vmatpush1.bf16.msra.mxu1 %v4533_v25  ;;  %1278 = vmatprep.subr.bf16.mxu0 %v4538_v26 }
  0x78   : > { %1321 = vmatprep.subr.bf16.mxu1 %v4541_v27  ;;  %v389_v27 = vld [vmem:[#allocation2 + $0x20] sm:$0xff] }
  0x7a   : > { %1279 = vmatpush1.bf16.msra.mxu0 %v4536_v28 }
  0x7b   : > { %1322 = vmatpush1.bf16.msra.mxu1 %v4539_v29  ;;  %1280 = vmatprep.subr.bf16.mxu0 %v4544_v30 }
  0x7c   : > { %1323 = vmatprep.subr.bf16.mxu1 %v4547_v31  ;;  %v386_v31 = vld [vmem:[#allocation2 + $0x18] sm:$0xff] }
  0x7e   : > { %1281 = vmatpush1.bf16.msra.mxu0 %v4542_v32 }
  0x7f   : > { %1324 = vmatpush1.bf16.msra.mxu1 %v4545_v33  ;;  %1282 = vmatprep.subr.bf16.mxu0 %v4550_v34 }
  0x80   : > { %1325 = vmatprep.subr.bf16.mxu1 %v4553_v35  ;;  %v387_v35 = vld [vmem:[#allocation2 + $0x10] sm:$0xff] }
  0x82   : > { %1283 = vmatpush1.bf16.msra.mxu0 %v4548_v36 }
  0x83   : > { %1326 = vmatpush1.bf16.msra.mxu1 %v4551_v37  ;;  %1284 = vmatprep.subr.bf16.mxu0 %v4556_v38 }
  0x84   : > { %1327 = vmatprep.subr.bf16.mxu1 %v4559_v39 }
  0x86   : > { %1285 = vmatpush1.bf16.msra.mxu0 %v4554_v40  ;;  %v390_v40 = vld [vmem:[#allocation2 + $0x28] sm:$0xff] }
  0x87   : > { %1328 = vmatpush1.bf16.msra.mxu1 %v4557_v41  ;;  %1286 = vmatprep.subr.bf16.mxu0 %v4562_v42 }
  0x88   : > { %1329 = vmatprep.subr.bf16.mxu1 %v4565_v43 }
  0x8a   : > { %1287 = vmatpush2.bf16.msra.mxu0 %v4560_v44 }
  0x8b   : > { %1330 = vmatpush2.bf16.msra.mxu1 %v4563_v45  ;;  %1288 = vmatprep.subr.bf16.mxu0 %v4568_v46  ;;  %v391_v45 = vld [vmem:[#allocation2 + $0x38] sm:$0xff] }
  0x8c   : > { %1331 = vmatprep.subr.bf16.mxu1 %v4571_v47 }
  0x8e   : > { %1289 = vmatpush2.bf16.msra.mxu0 %v4566_v48 }
  0x8f   : > { %1332 = vmatpush2.bf16.msra.mxu1 %v4569_v49  ;;  %1290 = vmatprep.subr.bf16.mxu0 %v4574_v50 }
  0x90   : > { %1333 = vmatprep.subr.bf16.mxu1 %v4577_v51 }
  0x92   : > { %1291 = vmatpush2.bf16.msra.mxu0 %v4572_v52 }
  0x93   : > { %1334 = vmatpush2.bf16.msra.mxu1 %v4575_v53  ;;  %1292 = vmatprep.subr.bf16.mxu0 %v4580_v54 }
  0x94   : > { %1335 = vmatprep.subr.bf16.mxu1 %v4583_v55 }
  0x96   : > { %1293 = vmatpush2.bf16.msra.mxu0 %v4578_v56 }
  0x97   : > { %1336 = vmatpush2.bf16.msra.mxu1 %v4581_v57  ;;  %1294 = vmatprep.subr.bf16.mxu0 %v4586_v58 }
  0x98   : > { %1337 = vmatprep.subr.bf16.mxu1 %v4589_v59 }
  0x9a   : > { %1295 = vmatpush2.bf16.msra.mxu0 %v4584_v60 }
  0x9b   : > { %1338 = vmatpush2.bf16.msra.mxu1 %v4587_v61  ;;  %1296 = vmatprep.subr.bf16.mxu0 %v4592_v62 }
  0x9c   : > { %1339 = vmatprep.subr.bf16.mxu1 %v4595_v63 }
  0x9e   : > { %1297 = vmatpush2.bf16.msra.mxu0 %v4590_v0 }
  0x9f   : > { %1340 = vmatpush2.bf16.msra.mxu1 %v4593_v1  ;;  %1298 = vmatprep.subr.bf16.mxu0 %v4598_v2 }
  0xa0   : > { %1341 = vmatprep.subr.bf16.mxu1 %v4601_v3 }
  0xa2   : > { %1299 = vmatpush2.bf16.msra.mxu0 %v4596_v4 }
  0xa3   : > { %1342 = vmatpush2.bf16.msra.mxu1 %v4599_v5  ;;  %1300 = vmatprep.subr.bf16.mxu0 %v4604_v6 }
  0xa4   : > { %1343 = vmatprep.subr.bf16.mxu1 %v4607_v7 }
  0xa6   : > { %1301 = vmatpush2.bf16.msra.mxu0 %v4602_v8 }
  0xa7   : > { %1344 = vmatpush2.bf16.msra.mxu1 %v4605_v9 }
  0xa9   : > { %1303 = vmatmul.mubr.bf16.vlgmr.msra.gmra.mxu0 %v5294_v10 }
  0xaa   : > { %1346 = vmatmul.mubr.bf16.vlgmr.msra.gmra.mxu1 %v5297_v11 }
 0x129   : > { %v1218_v12 = vpop.f32.mrf.mxu0 }
 0x12a   : > { %v1261_v14 = vpop.f32.mrf.mxu1 }
 0x12b   : > { %v1262_v15 = vadd.f32 %v1261_v14, %v1218_v12  ;;  %v1220_v16 = vpop.f32.mrf.mxu0 }
 0x12c   : > { %v1263_v18 = vpop.f32.mrf.mxu1 }
 0x12d   : > { %v1356_v19 = vadd.f32 %v1262_v15, %v384_v13  ;;  %v1264_v20 = vadd.f32 %v1263_v18, %v1220_v16  ;;  %v1222_v21 = vpop.f32.mrf.mxu0 }
 0x12e   : > { %v1265_v23 = vpop.f32.mrf.mxu1 }
 0x12f   : > { %1364 = vst [vmem:[#allocation2 + $0x30] sm:$0xff] %v1356_v19  ;;  %v1357_v24 = vadd.f32 %v1264_v20, %v385_v17  ;;  %v1266_v25 = vadd.f32 %v1265_v23, %v1222_v21  ;;  %v1224_v26 = vpop.f32.mrf.mxu0 }
 0x130   : > { %v1267_v10 = vpop.f32.mrf.mxu1 }
 0x131   : > { %1365 = vst [vmem:[#allocation2] sm:$0xff] %v1357_v24  ;;  %v1360_v11 = vadd.f32 %v1266_v25, %v388_v22  ;;  %v1268_v28 = vadd.f32 %v1267_v10, %v1224_v26 }
 0x133   : > { %1368 = vst [vmem:[#allocation2 + $0x8] sm:$0xff] %v1360_v11  ;;  %v1361_v29 = vadd.f32 %v1268_v28, %v389_v27 }
 0x135   : > { %1369 = vst [vmem:[#allocation2 + $0x20] sm:$0xff] %v1361_v29 }
 0x169   : > { %v1304_v30 = vpop.f32.mrf.mxu0 }
 0x16a   : > { %v1347_v32 = vpop.f32.mrf.mxu1 }
 0x16b   : > { %v1348_v33 = vadd.f32 %v1347_v32, %v1304_v30  ;;  %v1306_v34 = vpop.f32.mrf.mxu0 }
 0x16c   : > { %v1349_v36 = vpop.f32.mrf.mxu1 }
 0x16d   : > { %v1358_v37 = vadd.f32 %v1348_v33, %v386_v31  ;;  %v1350_v38 = vadd.f32 %v1349_v36, %v1306_v34  ;;  %v1308_v39 = vpop.f32.mrf.mxu0 }
 0x16e   : > { %v1351_v41 = vpop.f32.mrf.mxu1 }
 0x16f   : > { %1366 = vst [vmem:[#allocation2 + $0x18] sm:$0xff] %v1358_v37  ;;  %v1359_v42 = vadd.f32 %v1350_v38, %v387_v35  ;;  %v1352_v43 = vadd.f32 %v1351_v41, %v1308_v39  ;;  %v1310_v44 = vpop.f32.mrf.mxu0 }
 0x170   : > { %v1353_v46 = vpop.f32.mrf.mxu1 }
 0x171   : > { %1367 = vst [vmem:[#allocation2 + $0x10] sm:$0xff] %v1359_v42  ;;  %v1362_v47 = vadd.f32 %v1352_v43, %v390_v40  ;;  %v1354_v48 = vadd.f32 %v1353_v46, %v1310_v44  ;;  %1375 = sbr.rel (%p4057_p10) target bundleno = 1449 (0x5a9), region = 87 }
 0x173   : > { %1370 = vst [vmem:[#allocation2 + $0x28] sm:$0xff] %v1362_v47  ;;  %v1363_v49 = vadd.f32 %v1354_v48, %v391_v45 }
 0x175   : > { %1371 = vst [vmem:[#allocation2 + $0x38] sm:$0xff] %v1363_v49 }
 0x176   : > { %v1386_v50 = vlaneseq  ;;  %v1384_v51 = vld [vmem:[%s6471_s2] sm:$0xf]  ;;  %v4610_v53 = vld [vmem:[%s6472_s3 + $0x4e4] ss:$16 sps:$4 sm:$0xff]   ;;  %v1380_v54 = vld [vmem:[#allocation2 + $0x8] sm:$0xff] }
 0x177   : > { %v1381_v55 = vld [vmem:[#allocation2 + $0x20] sm:$0xff]  ;;  %2348 = vmatprep.subr.bf16.mxu0 %v4610_v53  ;;  %v1376_v42 = vld [vmem:[#allocation2 + $0x30] sm:$0xff]  ;;  %v1378_v44 = vld [vmem:[#allocation2 + $0x18] sm:$0xff] }
 0x178   : > { %v5369_v52 = vshrl.u32 %v1386_v50, 7  ;;  %v4612_v58 = vld [vmem:[%s6472_s3 + $0x6e4] ss:$16 sps:$4 sm:$0xff]   ;;  %v4614_v59 = vld [vmem:[%s6472_s3 + $0x4e0] ss:$16 sps:$4 sm:$0xff]  }
 0x179   : > { %v4615_v0 = vld [vmem:[%s6472_s3 + $0x6e0] ss:$16 sps:$4 sm:$0xff]   ;;  %2389 = vmatprep.subr.bf16.mxu1 %v4612_v58  ;;  %2349 = vmatpush1.bf16.msra.mxu0 %v4614_v59  ;;  %v4616_v1 = vld [vmem:[%s6472_s3 + $0x4c4] ss:$16 sps:$4 sm:$0xff]  }
 0x17a   : > { %v1382_v56 = vld [vmem:[#allocation2 + $0x28] sm:$0xff]  ;;  %v5381_v60 = vsub.s32 0, %v5369_v52  ;;  %v5384_v61 = vsub.s32 1, %v5369_v52  ;;  %v1396_v62 = vsub.s32 2, %v5369_v52  ;;  %v1400_v63 = vsub.s32 3, %v5369_v52  ;;  %2390 = vmatpush1.bf16.msra.mxu1 %v4615_v0  ;;  %2350 = vmatprep.subr.bf16.mxu0 %v4616_v1  ;;  %v1377_v43 = vld [vmem:[#allocation2] sm:$0xff] }
 0x17b   : > { %v4618_v6 = vld [vmem:[%s6472_s3 + $0x6c4] ss:$16 sps:$4 sm:$0xff]   ;;  %v4620_v7 = vld [vmem:[%s6472_s3 + $0x4c0] ss:$16 sps:$4 sm:$0xff]  }
 0x17c   : > { %v1383_v57 = vld [vmem:[#allocation2 + $0x38] sm:$0xff]  ;;  %v5395_v2 = vrot.slane %v1384_v51, %v5381_v60  ;;  %v5398_v3 = vrot.slane %v1384_v51, %v5384_v61  ;;  %v5402_v4 = vrot.slane %v1384_v51, %v1396_v62  ;;  %v5406_v5 = vrot.slane %v1384_v51, %v1400_v63  ;;  %v4621_v8 = vld [vmem:[%s6472_s3 + $0x6c0] ss:$16 sps:$4 sm:$0xff]   ;;  %2391 = vmatprep.subr.bf16.mxu1 %v4618_v6  ;;  %v4622_v15 = vld [vmem:[%s6472_s3 + $0x4a4] ss:$16 sps:$4 sm:$0xff]  }
 0x17d   : > { %2351 = vmatpush1.bf16.msra.mxu0 %v4620_v7  ;;  %v4624_v16 = vld [vmem:[%s6472_s3 + $0x6a4] ss:$16 sps:$4 sm:$0xff]   ;;  %v4626_v17 = vld [vmem:[%s6472_s3 + $0x4a0] ss:$16 sps:$4 sm:$0xff]  }
 0x17e   : > { %v5418_v9 = vadd.f32 %v5395_v2, %v1380_v54  ;;  %v5421_v12 = vadd.f32 %v5398_v3, %v1381_v55  ;;  %v5424_v13 = vadd.f32 %v5402_v4, %v1382_v56  ;;  %v5427_v14 = vadd.f32 %v5406_v5, %v1383_v57  ;;  %2392 = vmatpush1.bf16.msra.mxu1 %v4621_v8  ;;  %v4627_v21 = vld [vmem:[%s6472_s3 + $0x6a0] ss:$16 sps:$4 sm:$0xff]   ;;  %v4628_v22 = vld [vmem:[%s6472_s3 + $0x484] ss:$16 sps:$4 sm:$0xff]  }
 0x17f   : > { %2352 = vmatprep.subr.bf16.mxu0 %v4622_v15  ;;  %2393 = vmatprep.subr.bf16.mxu1 %v4624_v16  ;;  %v4630_v25 = vld [vmem:[%s6472_s3 + $0x684] ss:$16 sps:$4 sm:$0xff]   ;;  %v4632_v26 = vld [vmem:[%s6472_s3 + $0x480] ss:$16 sps:$4 sm:$0xff]   ;;  %v5504_v46 = vadd.f32 %v5395_v2, %v1376_v42  ;;  %v5507_v47 = vadd.f32 %v5398_v3, %v1377_v43  ;;  %v5510_v48 = vadd.f32 %v5402_v4, %v1378_v44 }
 0x180   : > { %v1418_v18 = vmul.f32 %v5418_v9, %v5418_v9  ;;  %v1419_v19 = vmul.f32 %v5421_v12, %v5421_v12  ;;  %v1420_v20 = vmul.f32 %v5424_v13, %v5424_v13  ;;  %v1421_v23 = vmul.f32 %v5427_v14, %v5427_v14  ;;  %v4633_v10 = vld [vmem:[%s6472_s3 + $0x680] ss:$16 sps:$4 sm:$0xff]   ;;  %v4634_v11 = vld [vmem:[%s6472_s3 + $0x464] ss:$16 sps:$4 sm:$0xff]  }
 0x181   : > { %2353 = vmatpush1.bf16.msra.mxu0 %v4626_v17  ;;  %v4636_v28 = vld [vmem:[%s6472_s3 + $0x664] ss:$16 sps:$4 sm:$0xff]   ;;  %v4638_v30 = vld [vmem:[%s6472_s3 + $0x460] ss:$16 sps:$4 sm:$0xff]   ;;  %v1414_v53 = vmul.f32 %v5504_v46, %v5504_v46  ;;  %v1415_v54 = vmul.f32 %v5507_v47, %v5507_v47  ;;  %v1416_v56 = vmul.f32 %v5510_v48, %v5510_v48 }
 0x182   : > { %v1427_v24 = vadd.f32 %v1419_v19, %v1418_v18  ;;  %2394 = vmatpush1.bf16.msra.mxu1 %v4627_v21  ;;  %2354 = vmatprep.subr.bf16.mxu0 %v4628_v22  ;;  %v4639_v31 = vld [vmem:[%s6472_s3 + $0x660] ss:$16 sps:$4 sm:$0xff]   ;;  %v4640_v32 = vld [vmem:[%s6472_s3 + $0x444] ss:$16 sps:$4 sm:$0xff]  }
 0x183   : > { %2395 = vmatprep.subr.bf16.mxu1 %v4630_v25  ;;  %v4642_v33 = vld [vmem:[%s6472_s3 + $0x644] ss:$16 sps:$4 sm:$0xff]   ;;  %v4644_v34 = vld [vmem:[%s6472_s3 + $0x440] ss:$16 sps:$4 sm:$0xff]   ;;  %v1422_v59 = vadd.f32 %v1415_v54, %v1414_v53  ;;  %v4709_v53 = vld [vmem:[%s6472_s3 + $0x6e8] ss:$16 sps:$4 sm:$0xff]  }
 0x184   : > { %v1428_v27 = vadd.f32 %v1427_v24, %v1420_v20  ;;  %v4645_v35 = vld [vmem:[%s6472_s3 + $0x640] ss:$16 sps:$4 sm:$0xff]   ;;  %v4646_v36 = vld [vmem:[%s6472_s3 + $0x424] ss:$16 sps:$4 sm:$0xff]  }
 0x185   : > { %2355 = vmatpush1.bf16.msra.mxu0 %v4632_v26  ;;  %v4648_v37 = vld [vmem:[%s6472_s3 + $0x624] ss:$16 sps:$4 sm:$0xff]   ;;  %v4650_v38 = vld [vmem:[%s6472_s3 + $0x420] ss:$16 sps:$4 sm:$0xff]   ;;  %v1423_v2 = vadd.f32 %v1422_v59, %v1416_v56  ;;  %v4720_v56 = vld [vmem:[%s6472_s3 + $0x4ac] ss:$16 sps:$4 sm:$0xff]  }
 0x186   : > { %v1429_v29 = vadd.f32 %v1428_v27, %v1421_v23  ;;  %2396 = vmatpush1.bf16.msra.mxu1 %v4633_v10  ;;  %2356 = vmatprep.subr.bf16.mxu0 %v4634_v11  ;;  %v4651_v39 = vld [vmem:[%s6472_s3 + $0x620] ss:$16 sps:$4 sm:$0xff]   ;;  %v4652_v40 = vld [vmem:[%s6472_s3 + $0x404] ss:$16 sps:$4 sm:$0xff]   ;;  %v4721_v59 = vld [vmem:[%s6472_s3 + $0x6a8] ss:$16 sps:$4 sm:$0xff]  }
 0x187   : > { %2397 = vmatprep.subr.bf16.mxu1 %v4636_v28  ;;  %v4654_v41 = vld [vmem:[%s6472_s3 + $0x604] ss:$16 sps:$4 sm:$0xff]   ;;  %v4656_v50 = vld [vmem:[%s6472_s3 + $0x400] ss:$16 sps:$4 sm:$0xff]  }
 0x188   : > { %1430 = vadd.xlane.f32.xlu0 %v1429_v29  ;;  %v1379_v45 = vld [vmem:[#allocation2 + $0x10] sm:$0xff]  ;;  %v3414_v52 = vld [vmem:[%s6475_s6] sm:$0x3] }
 0x189   : > { %2357 = vmatpush1.bf16.msra.mxu0 %v4638_v30  ;;  %v5513_v49 = vadd.f32 %v5406_v5, %v1379_v45  ;;  %v4657_v51 = vld [vmem:[%s6472_s3 + $0x600] ss:$16 sps:$4 sm:$0xff]   ;;  %v4658_v55 = vld [vmem:[%s6472_s3 + $0x5e4] ss:$16 sps:$4 sm:$0xff]  }
 0x18a   : > { %2398 = vmatpush1.bf16.msra.mxu1 %v4639_v31  ;;  %2358 = vmatprep.subr.bf16.mxu0 %v4640_v32  ;;  %v4660_v57 = vld [vmem:[%s6472_s3 + $0x7e4] ss:$16 sps:$4 sm:$0xff]   ;;  %v4662_v0 = vld [vmem:[%s6472_s3 + $0x5e0] ss:$16 sps:$4 sm:$0xff]  }
 0x18b   : > { %2399 = vmatprep.subr.bf16.mxu1 %v4642_v33  ;;  %v1417_v58 = vmul.f32 %v5513_v49, %v5513_v49  ;;  %v4663_v1 = vld [vmem:[%s6472_s3 + $0x7e0] ss:$16 sps:$4 sm:$0xff]   ;;  %v4664_v3 = vld [vmem:[%s6472_s3 + $0x5c4] ss:$16 sps:$4 sm:$0xff]  }
 0x18c   : > { %v4666_v5 = vld [vmem:[%s6472_s3 + $0x7c4] ss:$16 sps:$4 sm:$0xff]   ;;  %v4668_v6 = vld [vmem:[%s6472_s3 + $0x5c0] ss:$16 sps:$4 sm:$0xff]  }
 0x18d   : > { %2359 = vmatpush1.bf16.msra.mxu0 %v4644_v34  ;;  %v1424_v4 = vadd.f32 %v1423_v2, %v1417_v58  ;;  %v4669_v7 = vld [vmem:[%s6472_s3 + $0x7c0] ss:$16 sps:$4 sm:$0xff]   ;;  %v4670_v8 = vld [vmem:[%s6472_s3 + $0x5a4] ss:$16 sps:$4 sm:$0xff]   ;;  %v4718_v58 = vld [vmem:[%s6472_s3 + $0x4a8] ss:$16 sps:$4 sm:$0xff]  }
 0x18e   : > { %2400 = vmatpush1.bf16.msra.mxu1 %v4645_v35  ;;  %2360 = vmatprep.subr.bf16.mxu0 %v4646_v36  ;;  %v4672_v15 = vld [vmem:[%s6472_s3 + $0x7a4] ss:$16 sps:$4 sm:$0xff]   ;;  %v4674_v16 = vld [vmem:[%s6472_s3 + $0x5a0] ss:$16 sps:$4 sm:$0xff]   ;;  %v4708_v36 = vld [vmem:[%s6472_s3 + $0x4ec] ss:$16 sps:$4 sm:$0xff]  }
 0x18f   : > { %2401 = vmatprep.subr.bf16.mxu1 %v4648_v37  ;;  %1425 = vadd.xlane.f32.xlu0 %v1424_v4  ;;  %v4675_v17 = vld [vmem:[%s6472_s3 + $0x7a0] ss:$16 sps:$4 sm:$0xff]   ;;  %v4676_v18 = vld [vmem:[%s6472_s3 + $0x584] ss:$16 sps:$4 sm:$0xff]   ;;  %v4711_v37 = vld [vmem:[%s6472_s3 + $0x6ec] ss:$16 sps:$4 sm:$0xff]  }
 0x190   : > { %v4678_v19 = vld [vmem:[%s6472_s3 + $0x784] ss:$16 sps:$4 sm:$0xff]   ;;  %v4680_v20 = vld [vmem:[%s6472_s3 + $0x580] ss:$16 sps:$4 sm:$0xff]   ;;  %v4724_v2 = vld [vmem:[%s6472_s3 + $0x488] ss:$16 sps:$4 sm:$0xff]  }
 0x191   : > { %2361 = vmatpush1.bf16.msra.mxu0 %v4650_v38  ;;  %v4681_v21 = vld [vmem:[%s6472_s3 + $0x780] ss:$16 sps:$4 sm:$0xff]   ;;  %v4682_v22 = vld [vmem:[%s6472_s3 + $0x564] ss:$16 sps:$4 sm:$0xff]   ;;  %v4732_v4 = vld [vmem:[%s6472_s3 + $0x46c] ss:$16 sps:$4 sm:$0xff]  }
 0x192   : > { %2402 = vmatpush1.bf16.msra.mxu1 %v4651_v39  ;;  %2362 = vmatprep.subr.bf16.mxu0 %v4652_v40  ;;  %v4684_v23 = vld [vmem:[%s6472_s3 + $0x764] ss:$16 sps:$4 sm:$0xff]   ;;  %v4686_v24 = vld [vmem:[%s6472_s3 + $0x560] ss:$16 sps:$4 sm:$0xff]  }
 0x193   : > { %2403 = vmatprep.subr.bf16.mxu1 %v4654_v41  ;;  %v4687_v25 = vld [vmem:[%s6472_s3 + $0x760] ss:$16 sps:$4 sm:$0xff]   ;;  %v4688_v26 = vld [vmem:[%s6472_s3 + $0x544] ss:$16 sps:$4 sm:$0xff]  }
 0x194   : > { %v4690_v27 = vld [vmem:[%s6472_s3 + $0x744] ss:$16 sps:$4 sm:$0xff]   ;;  %v4692_v10 = vld [vmem:[%s6472_s3 + $0x540] ss:$16 sps:$4 sm:$0xff]  }
 0x195   : > { %2363 = vmatpush1.bf16.msra.mxu0 %v4656_v50  ;;  %v4693_v11 = vld [vmem:[%s6472_s3 + $0x740] ss:$16 sps:$4 sm:$0xff]   ;;  %v4694_v28 = vld [vmem:[%s6472_s3 + $0x524] ss:$16 sps:$4 sm:$0xff]  }
 0x196   : > { %2404 = vmatpush1.bf16.msra.mxu1 %v4657_v51  ;;  %2364 = vmatprep.subr.bf16.mxu0 %v4658_v55  ;;  %v4696_v29 = vld [vmem:[%s6472_s3 + $0x724] ss:$16 sps:$4 sm:$0xff]   ;;  %v4698_v30 = vld [vmem:[%s6472_s3 + $0x520] ss:$16 sps:$4 sm:$0xff]   ;;  %v4706_v51 = vld [vmem:[%s6472_s3 + $0x4e8] ss:$16 sps:$4 sm:$0xff]  }
 0x197   : > { %2405 = vmatprep.subr.bf16.mxu1 %v4660_v57  ;;  %v4699_v31 = vld [vmem:[%s6472_s3 + $0x720] ss:$16 sps:$4 sm:$0xff]   ;;  %v4700_v32 = vld [vmem:[%s6472_s3 + $0x504] ss:$16 sps:$4 sm:$0xff]   ;;  %v4723_v57 = vld [vmem:[%s6472_s3 + $0x6ac] ss:$16 sps:$4 sm:$0xff]  }
 0x198   : > { %v4702_v33 = vld [vmem:[%s6472_s3 + $0x704] ss:$16 sps:$4 sm:$0xff]   ;;  %v4704_v34 = vld [vmem:[%s6472_s3 + $0x500] ss:$16 sps:$4 sm:$0xff]  }
 0x199   : > { %2365 = vmatpush2.bf16.msra.mxu0 %v4662_v0  ;;  %v4705_v35 = vld [vmem:[%s6472_s3 + $0x700] ss:$16 sps:$4 sm:$0xff]   ;;  %v4726_v0 = vld [vmem:[%s6472_s3 + $0x48c] ss:$16 sps:$4 sm:$0xff]  }
 0x19a   : > { %2406 = vmatpush2.bf16.msra.mxu1 %v4663_v1  ;;  %2366 = vmatprep.subr.bf16.mxu0 %v4664_v3  ;;  %v4729_v1 = vld [vmem:[%s6472_s3 + $0x68c] ss:$16 sps:$4 sm:$0xff]   ;;  %v4727_v3 = vld [vmem:[%s6472_s3 + $0x688] ss:$16 sps:$4 sm:$0xff]  }
 0x19b   : > { %2407 = vmatprep.subr.bf16.mxu1 %v4666_v5  ;;  %v4735_v5 = vld [vmem:[%s6472_s3 + $0x66c] ss:$16 sps:$4 sm:$0xff]  }
 0x19d   : > { %2367 = vmatpush2.bf16.msra.mxu0 %v4668_v6  ;;  %v4730_v6 = vld [vmem:[%s6472_s3 + $0x468] ss:$16 sps:$4 sm:$0xff]  }
 0x19e   : > { %2408 = vmatpush2.bf16.msra.mxu1 %v4669_v7  ;;  %2368 = vmatprep.subr.bf16.mxu0 %v4670_v8  ;;  %v4733_v7 = vld [vmem:[%s6472_s3 + $0x668] ss:$16 sps:$4 sm:$0xff]   ;;  %v4738_v8 = vld [vmem:[%s6472_s3 + $0x44c] ss:$16 sps:$4 sm:$0xff]  }
 0x19f   : > { %2409 = vmatprep.subr.bf16.mxu1 %v4672_v15  ;;  %v4741_v15 = vld [vmem:[%s6472_s3 + $0x64c] ss:$16 sps:$4 sm:$0xff]  }
 0x1a1   : > { %2369 = vmatpush2.bf16.msra.mxu0 %v4674_v16  ;;  %v4736_v16 = vld [vmem:[%s6472_s3 + $0x448] ss:$16 sps:$4 sm:$0xff]  }
 0x1a2   : > { %2410 = vmatpush2.bf16.msra.mxu1 %v4675_v17  ;;  %2370 = vmatprep.subr.bf16.mxu0 %v4676_v18  ;;  %v4739_v17 = vld [vmem:[%s6472_s3 + $0x648] ss:$16 sps:$4 sm:$0xff]   ;;  %v4744_v18 = vld [vmem:[%s6472_s3 + $0x42c] ss:$16 sps:$4 sm:$0xff]  }
 0x1a3   : > { %2411 = vmatprep.subr.bf16.mxu1 %v4678_v19  ;;  %v4747_v19 = vld [vmem:[%s6472_s3 + $0x62c] ss:$16 sps:$4 sm:$0xff]  }
 0x1a5   : > { %2371 = vmatpush2.bf16.msra.mxu0 %v4680_v20  ;;  %v4742_v20 = vld [vmem:[%s6472_s3 + $0x428] ss:$16 sps:$4 sm:$0xff]  }
 0x1a6   : > { %2412 = vmatpush2.bf16.msra.mxu1 %v4681_v21  ;;  %2372 = vmatprep.subr.bf16.mxu0 %v4682_v22  ;;  %v4745_v21 = vld [vmem:[%s6472_s3 + $0x628] ss:$16 sps:$4 sm:$0xff]   ;;  %v4750_v22 = vld [vmem:[%s6472_s3 + $0x40c] ss:$16 sps:$4 sm:$0xff]  }
 0x1a7   : > { %2413 = vmatprep.subr.bf16.mxu1 %v4684_v23  ;;  %v4753_v23 = vld [vmem:[%s6472_s3 + $0x60c] ss:$16 sps:$4 sm:$0xff]  }
 0x1a9   : > { %2373 = vmatpush2.bf16.msra.mxu0 %v4686_v24  ;;  %v4748_v24 = vld [vmem:[%s6472_s3 + $0x408] ss:$16 sps:$4 sm:$0xff]  }
 0x1aa   : > { %2414 = vmatpush2.bf16.msra.mxu1 %v4687_v25  ;;  %2374 = vmatprep.subr.bf16.mxu0 %v4688_v26  ;;  %v4751_v25 = vld [vmem:[%s6472_s3 + $0x608] ss:$16 sps:$4 sm:$0xff]   ;;  %v4756_v26 = vld [vmem:[%s6472_s3 + $0x5ec] ss:$16 sps:$4 sm:$0xff]  }
 0x1ab   : > { %2415 = vmatprep.subr.bf16.mxu1 %v4690_v27  ;;  %v4759_v27 = vld [vmem:[%s6472_s3 + $0x7ec] ss:$16 sps:$4 sm:$0xff]  }
 0x1ad   : > { %2375 = vmatpush2.bf16.msra.mxu0 %v4692_v10  ;;  %v4754_v10 = vld [vmem:[%s6472_s3 + $0x5e8] ss:$16 sps:$4 sm:$0xff]  }
 0x1ae   : > { %2416 = vmatpush2.bf16.msra.mxu1 %v4693_v11  ;;  %2376 = vmatprep.subr.bf16.mxu0 %v4694_v28  ;;  %v4757_v11 = vld [vmem:[%s6472_s3 + $0x7e8] ss:$16 sps:$4 sm:$0xff]   ;;  %v4762_v28 = vld [vmem:[%s6472_s3 + $0x5cc] ss:$16 sps:$4 sm:$0xff]  }
 0x1af   : > { %2417 = vmatprep.subr.bf16.mxu1 %v4696_v29  ;;  %v4765_v29 = vld [vmem:[%s6472_s3 + $0x7cc] ss:$16 sps:$4 sm:$0xff]  }
 0x1b1   : > { %2377 = vmatpush2.bf16.msra.mxu0 %v4698_v30  ;;  %v4760_v30 = vld [vmem:[%s6472_s3 + $0x5c8] ss:$16 sps:$4 sm:$0xff]  }
 0x1b2   : > { %2418 = vmatpush2.bf16.msra.mxu1 %v4699_v31  ;;  %2378 = vmatprep.subr.bf16.mxu0 %v4700_v32  ;;  %v4763_v31 = vld [vmem:[%s6472_s3 + $0x7c8] ss:$16 sps:$4 sm:$0xff]   ;;  %v4768_v32 = vld [vmem:[%s6472_s3 + $0x5ac] ss:$16 sps:$4 sm:$0xff]  }
 0x1b3   : > { %2419 = vmatprep.subr.bf16.mxu1 %v4702_v33  ;;  %v4771_v33 = vld [vmem:[%s6472_s3 + $0x7ac] ss:$16 sps:$4 sm:$0xff]  }
 0x1b5   : > { %2379 = vmatpush2.bf16.msra.mxu0 %v4704_v34 }
 0x1b6   : > { %2420 = vmatpush2.bf16.msra.mxu1 %v4705_v35  ;;  %2430 = vmatprep.subr.bf16.mxu0 %v4708_v36  ;;  %v4766_v35 = vld [vmem:[%s6472_s3 + $0x5a8] ss:$16 sps:$4 sm:$0xff]  }
 0x1b7   : > { %2471 = vmatprep.subr.bf16.mxu1 %v4711_v37  ;;  %v4769_v36 = vld [vmem:[%s6472_s3 + $0x7a8] ss:$16 sps:$4 sm:$0xff]   ;;  %v4774_v37 = vld [vmem:[%s6472_s3 + $0x58c] ss:$16 sps:$4 sm:$0xff]  }
 0x211   : > { %v1431_v38 = vpop.xlane.xlu0 %1430 }
 0x212   : > { %v1433_v39 = vmax.f32 %v1431_v38, 1e-24  ;;  %v4777_v38 = vld [vmem:[%s6472_s3 + $0x78c] ss:$16 sps:$4 sm:$0xff]  }
 0x214   : > { %5090 = vrsqrt.f32 %v1433_v39 }
 0x218   : > { %v1426_v34 = vpop.xlane.xlu0 %1425 }
 0x219   : > { %v1432_v39 = vmax.f32 %v1426_v34, 1e-24  ;;  %v4846_v34 = vld [vmem:[%s6472_s3 + $0x4] ss:$16 sps:$4 sm:$0xff]  }
 0x21b   : > { %5092 = vrsqrt.f32 %v1432_v39  ;;  %v4855_v39 = vld [vmem:[%s6472_s3 + $0x3e4] ss:$16 sps:$4 sm:$0xff]  }
 0x221   : > { %v5091_v40 = vpop.eup %5090 }
 0x222   : > { %v1441_v41 = vmul.f32 %v5091_v40, %v5421_v12  ;;  %v1443_v42 = vmul.f32 %v5091_v40, %v5427_v14  ;;  %v1440_v43 = vmul.f32 %v5091_v40, %v5418_v9  ;;  %v1442_v44 = vmul.f32 %v5091_v40, %v5424_v13  ;;  %v4714_v9 = vld [vmem:[%s6472_s3 + $0x4cc] ss:$16 sps:$4 sm:$0xff]   ;;  %v4712_v13 = vld [vmem:[%s6472_s3 + $0x4c8] ss:$16 sps:$4 sm:$0xff]  }
 0x223   : > { %v4717_v12 = vld [vmem:[%s6472_s3 + $0x6cc] ss:$16 sps:$4 sm:$0xff]   ;;  %v4715_v14 = vld [vmem:[%s6472_s3 + $0x6c8] ss:$16 sps:$4 sm:$0xff]  }
 0x224   : > { %v1449_v45 = vpack.c.bf16 %v1441_v41, %v1441_v41  ;;  %v1451_v50 = vpack.c.bf16 %v1443_v42, %v1443_v42  ;;  %v5641_v54 = vpack.c.bf16 %v1440_v43, %v1440_v43  ;;  %v5643_v55 = vpack.c.bf16 %v1442_v44, %v1442_v44  ;;  %v4772_v40 = vld [vmem:[%s6472_s3 + $0x588] ss:$16 sps:$4 sm:$0xff]   ;;  %v4780_v42 = vld [vmem:[%s6472_s3 + $0x56c] ss:$16 sps:$4 sm:$0xff]  }
 0x225   : > { %v4775_v41 = vld [vmem:[%s6472_s3 + $0x788] ss:$16 sps:$4 sm:$0xff]   ;;  %v4783_v43 = vld [vmem:[%s6472_s3 + $0x76c] ss:$16 sps:$4 sm:$0xff]  }
 0x226   : > { %2380 = vmatprep.mubr.bf16.mxu0 %v1449_v45  ;;  %2421 = vmatprep.mubr.bf16.mxu1 %v1451_v50  ;;  %v4778_v44 = vld [vmem:[%s6472_s3 + $0x568] ss:$16 sps:$4 sm:$0xff]  }
 0x227   : > { %2381 = vmatmul.mubr.bf16.vlgmr.msra.gmra.mxu0 %v5641_v54  ;;  %2422 = vmatmul.mubr.bf16.vlgmr.msra.gmra.mxu1 %v5643_v55 }
 0x228   : > { %2431 = vmatpush1.bf16.msra.mxu0 %v4706_v51  ;;  %2472 = vmatpush1.bf16.msra.mxu1 %v4709_v53  ;;  %v4789_v51 = vld [vmem:[%s6472_s3 + $0x74c] ss:$16 sps:$4 sm:$0xff]   ;;  %v4784_v53 = vld [vmem:[%s6472_s3 + $0x548] ss:$16 sps:$4 sm:$0xff]  }
 0x229   : > { %2462 = vmatprep.mubr.bf16.mxu0 %v1449_v45  ;;  %2503 = vmatprep.mubr.bf16.mxu1 %v1451_v50  ;;  %v4781_v45 = vld [vmem:[%s6472_s3 + $0x768] ss:$16 sps:$4 sm:$0xff]   ;;  %v4786_v50 = vld [vmem:[%s6472_s3 + $0x54c] ss:$16 sps:$4 sm:$0xff]  }
 0x22a   : > { %2432 = vmatprep.subr.bf16.mxu0 %v4714_v9  ;;  %2473 = vmatprep.subr.bf16.mxu1 %v4717_v12  ;;  %v4787_v9 = vld [vmem:[%s6472_s3 + $0x748] ss:$16 sps:$4 sm:$0xff]   ;;  %v4792_v12 = vld [vmem:[%s6472_s3 + $0x52c] ss:$16 sps:$4 sm:$0xff]  }
 0x22c   : > { %2433 = vmatpush1.bf16.msra.mxu0 %v4712_v13  ;;  %2474 = vmatpush1.bf16.msra.mxu1 %v4715_v14  ;;  %v4795_v13 = vld [vmem:[%s6472_s3 + $0x72c] ss:$16 sps:$4 sm:$0xff]   ;;  %v4790_v14 = vld [vmem:[%s6472_s3 + $0x528] ss:$16 sps:$4 sm:$0xff]  }
 0x22d   : > { %2434 = vmatprep.subr.bf16.mxu0 %v4720_v56  ;;  %2475 = vmatprep.subr.bf16.mxu1 %v4723_v57  ;;  %v4793_v56 = vld [vmem:[%s6472_s3 + $0x728] ss:$16 sps:$4 sm:$0xff]   ;;  %v4798_v57 = vld [vmem:[%s6472_s3 + $0x50c] ss:$16 sps:$4 sm:$0xff]  }
 0x230   : > { %2435 = vmatpush1.bf16.msra.mxu0 %v4718_v58  ;;  %2476 = vmatpush1.bf16.msra.mxu1 %v4721_v59  ;;  %v4801_v58 = vld [vmem:[%s6472_s3 + $0x70c] ss:$16 sps:$4 sm:$0xff]   ;;  %v5821_v59 = vpop.eup %5092 }
 0x231   : > { %2436 = vmatprep.subr.bf16.mxu0 %v4726_v0  ;;  %2477 = vmatprep.subr.bf16.mxu1 %v4729_v1  ;;  %v4796_v0 = vld [vmem:[%s6472_s3 + $0x508] ss:$16 sps:$4 sm:$0xff]  }
 0x232   : > { %v4799_v1 = vld [vmem:[%s6472_s3 + $0x708] ss:$16 sps:$4 sm:$0xff]  }
 0x234   : > { %2437 = vmatpush1.bf16.msra.mxu0 %v4724_v2  ;;  %2478 = vmatpush1.bf16.msra.mxu1 %v4727_v3  ;;  %v4804_v2 = vld [vmem:[%s6472_s3 + $0xe4] ss:$16 sps:$4 sm:$0xff]  }
 0x235   : > { %2438 = vmatprep.subr.bf16.mxu0 %v4732_v4  ;;  %2479 = vmatprep.subr.bf16.mxu1 %v4735_v5  ;;  %v4807_v3 = vld [vmem:[%s6472_s3 + $0x2e4] ss:$16 sps:$4 sm:$0xff]   ;;  %v1437_v4 = vmul.f32 %v5821_v59, %v5507_v47  ;;  %v1439_v5 = vmul.f32 %v5821_v59, %v5513_v49 }
 0x236   : > { %v4813_v47 = vld [vmem:[%s6472_s3 + $0x2c4] ss:$16 sps:$4 sm:$0xff]  }
 0x237   : > { %v5851_v49 = vpack.c.bf16 %v1437_v4, %v1437_v4  ;;  %v4880_v4 = vld [vmem:[%s6472_s3 + $0x140] ss:$16 sps:$4 sm:$0xff]  }
 0x238   : > { %2439 = vmatpush1.bf16.msra.mxu0 %v4730_v6  ;;  %2480 = vmatpush1.bf16.msra.mxu1 %v4733_v7  ;;  %v4802_v6 = vld [vmem:[%s6472_s3 + $0xe0] ss:$16 sps:$4 sm:$0xff]  }
 0x239   : > { %2440 = vmatprep.subr.bf16.mxu0 %v4738_v8  ;;  %2481 = vmatprep.subr.bf16.mxu1 %v4741_v15  ;;  %v4805_v7 = vld [vmem:[%s6472_s3 + $0x2e0] ss:$16 sps:$4 sm:$0xff]   ;;  %v4810_v8 = vld [vmem:[%s6472_s3 + $0xc4] ss:$16 sps:$4 sm:$0xff]   ;;  %v5853_v15 = vpack.c.bf16 %v1439_v5, %v1439_v5 }
 0x23a   : > { %v4883_v5 = vld [vmem:[%s6472_s3 + $0x340] ss:$16 sps:$4 sm:$0xff]  }
 0x23c   : > { %2441 = vmatpush1.bf16.msra.mxu0 %v4736_v16  ;;  %2482 = vmatpush1.bf16.msra.mxu1 %v4739_v17  ;;  %v4808_v16 = vld [vmem:[%s6472_s3 + $0xc0] ss:$16 sps:$4 sm:$0xff]  }
 0x23d   : > { %2442 = vmatprep.subr.bf16.mxu0 %v4744_v18  ;;  %2483 = vmatprep.subr.bf16.mxu1 %v4747_v19  ;;  %v4811_v17 = vld [vmem:[%s6472_s3 + $0x2c0] ss:$16 sps:$4 sm:$0xff]   ;;  %v4816_v18 = vld [vmem:[%s6472_s3 + $0xa4] ss:$16 sps:$4 sm:$0xff]  }
 0x23e   : > { %v4817_v19 = vld [vmem:[%s6472_s3 + $0x2a0] ss:$16 sps:$4 sm:$0xff]  }
 0x240   : > { %2443 = vmatpush1.bf16.msra.mxu0 %v4742_v20  ;;  %2484 = vmatpush1.bf16.msra.mxu1 %v4745_v21  ;;  %v4822_v20 = vld [vmem:[%s6472_s3 + $0x84] ss:$16 sps:$4 sm:$0xff]  }
 0x241   : > { %2444 = vmatprep.subr.bf16.mxu0 %v4750_v22  ;;  %2485 = vmatprep.subr.bf16.mxu1 %v4753_v23  ;;  %v4825_v21 = vld [vmem:[%s6472_s3 + $0x284] ss:$16 sps:$4 sm:$0xff]   ;;  %v4820_v22 = vld [vmem:[%s6472_s3 + $0x80] ss:$16 sps:$4 sm:$0xff]  }
 0x242   : > { %v4823_v23 = vld [vmem:[%s6472_s3 + $0x280] ss:$16 sps:$4 sm:$0xff]  }
 0x244   : > { %2445 = vmatpush1.bf16.msra.mxu0 %v4748_v24  ;;  %2486 = vmatpush1.bf16.msra.mxu1 %v4751_v25  ;;  %v4828_v24 = vld [vmem:[%s6472_s3 + $0x64] ss:$16 sps:$4 sm:$0xff]  }
 0x245   : > { %2446 = vmatprep.subr.bf16.mxu0 %v4756_v26  ;;  %2487 = vmatprep.subr.bf16.mxu1 %v4759_v27  ;;  %v4831_v25 = vld [vmem:[%s6472_s3 + $0x264] ss:$16 sps:$4 sm:$0xff]   ;;  %v4826_v26 = vld [vmem:[%s6472_s3 + $0x60] ss:$16 sps:$4 sm:$0xff]  }
 0x246   : > { %v4829_v27 = vld [vmem:[%s6472_s3 + $0x260] ss:$16 sps:$4 sm:$0xff]  }
 0x248   : > { %2447 = vmatpush2.bf16.msra.mxu0 %v4754_v10  ;;  %2488 = vmatpush2.bf16.msra.mxu1 %v4757_v11  ;;  %v4834_v10 = vld [vmem:[%s6472_s3 + $0x44] ss:$16 sps:$4 sm:$0xff]  }
 0x249   : > { %2448 = vmatprep.subr.bf16.mxu0 %v4762_v28  ;;  %2489 = vmatprep.subr.bf16.mxu1 %v4765_v29  ;;  %v4837_v11 = vld [vmem:[%s6472_s3 + $0x244] ss:$16 sps:$4 sm:$0xff]   ;;  %v4832_v28 = vld [vmem:[%s6472_s3 + $0x40] ss:$16 sps:$4 sm:$0xff]  }
 0x24a   : > { %v4835_v29 = vld [vmem:[%s6472_s3 + $0x240] ss:$16 sps:$4 sm:$0xff]  }
 0x24c   : > { %2449 = vmatpush2.bf16.msra.mxu0 %v4760_v30  ;;  %2490 = vmatpush2.bf16.msra.mxu1 %v4763_v31  ;;  %v4840_v30 = vld [vmem:[%s6472_s3 + $0x24] ss:$16 sps:$4 sm:$0xff]  }
 0x24d   : > { %2450 = vmatprep.subr.bf16.mxu0 %v4768_v32  ;;  %2491 = vmatprep.subr.bf16.mxu1 %v4771_v33  ;;  %v4843_v31 = vld [vmem:[%s6472_s3 + $0x224] ss:$16 sps:$4 sm:$0xff]   ;;  %v4838_v32 = vld [vmem:[%s6472_s3 + $0x20] ss:$16 sps:$4 sm:$0xff]  }
 0x24e   : > { %v4841_v33 = vld [vmem:[%s6472_s3 + $0x220] ss:$16 sps:$4 sm:$0xff]  }
 0x250   : > { %2451 = vmatpush2.bf16.msra.mxu0 %v4766_v35  ;;  %2492 = vmatpush2.bf16.msra.mxu1 %v4769_v36  ;;  %v4849_v35 = vld [vmem:[%s6472_s3 + $0x204] ss:$16 sps:$4 sm:$0xff]   ;;  %v4844_v36 = vld [vmem:[%s6472_s3] ss:$16 sps:$4 sm:$0xff]  }
 0x251   : > { %2452 = vmatprep.subr.bf16.mxu0 %v4774_v37  ;;  %2493 = vmatprep.subr.bf16.mxu1 %v4777_v38  ;;  %v4847_v37 = vld [vmem:[%s6472_s3 + $0x200] ss:$16 sps:$4 sm:$0xff]   ;;  %v4852_v38 = vld [vmem:[%s6472_s3 + $0x1e4] ss:$16 sps:$4 sm:$0xff]  }
 0x254   : > { %2453 = vmatpush2.bf16.msra.mxu0 %v4772_v40  ;;  %2494 = vmatpush2.bf16.msra.mxu1 %v4775_v41  ;;  %v4850_v40 = vld [vmem:[%s6472_s3 + $0x1e0] ss:$16 sps:$4 sm:$0xff]  }
 0x255   : > { %2454 = vmatprep.subr.bf16.mxu0 %v4780_v42  ;;  %2495 = vmatprep.subr.bf16.mxu1 %v4783_v43  ;;  %v4853_v41 = vld [vmem:[%s6472_s3 + $0x3e0] ss:$16 sps:$4 sm:$0xff]   ;;  %v4858_v42 = vld [vmem:[%s6472_s3 + $0x1c4] ss:$16 sps:$4 sm:$0xff]  }
 0x256   : > { %v4861_v43 = vld [vmem:[%s6472_s3 + $0x3c4] ss:$16 sps:$4 sm:$0xff]  }
 0x258   : > { %2455 = vmatpush2.bf16.msra.mxu0 %v4778_v44  ;;  %2496 = vmatpush2.bf16.msra.mxu1 %v4781_v45  ;;  %v4856_v44 = vld [vmem:[%s6472_s3 + $0x1c0] ss:$16 sps:$4 sm:$0xff]  }
 0x259   : > { %2456 = vmatprep.subr.bf16.mxu0 %v4786_v50  ;;  %2497 = vmatprep.subr.bf16.mxu1 %v4789_v51  ;;  %v4859_v45 = vld [vmem:[%s6472_s3 + $0x3c0] ss:$16 sps:$4 sm:$0xff]   ;;  %v4864_v50 = vld [vmem:[%s6472_s3 + $0x1a4] ss:$16 sps:$4 sm:$0xff]  }
 0x25a   : > { %v4867_v51 = vld [vmem:[%s6472_s3 + $0x3a4] ss:$16 sps:$4 sm:$0xff]  }
 0x25c   : > { %2457 = vmatpush2.bf16.msra.mxu0 %v4784_v53  ;;  %2498 = vmatpush2.bf16.msra.mxu1 %v4787_v9  ;;  %v4862_v53 = vld [vmem:[%s6472_s3 + $0x1a0] ss:$16 sps:$4 sm:$0xff]  }
 0x25d   : > { %2458 = vmatprep.subr.bf16.mxu0 %v4792_v12  ;;  %2499 = vmatprep.subr.bf16.mxu1 %v4795_v13  ;;  %v4865_v9 = vld [vmem:[%s6472_s3 + $0x3a0] ss:$16 sps:$4 sm:$0xff]   ;;  %v4870_v12 = vld [vmem:[%s6472_s3 + $0x184] ss:$16 sps:$4 sm:$0xff]  }
 0x25e   : > { %v4873_v13 = vld [vmem:[%s6472_s3 + $0x384] ss:$16 sps:$4 sm:$0xff]  }
 0x260   : > { %2459 = vmatpush2.bf16.msra.mxu0 %v4790_v14  ;;  %2500 = vmatpush2.bf16.msra.mxu1 %v4793_v56  ;;  %v4868_v14 = vld [vmem:[%s6472_s3 + $0x180] ss:$16 sps:$4 sm:$0xff]  }
 0x261   : > { %2460 = vmatprep.subr.bf16.mxu0 %v4798_v57  ;;  %2501 = vmatprep.subr.bf16.mxu1 %v4801_v58  ;;  %v4871_v56 = vld [vmem:[%s6472_s3 + $0x380] ss:$16 sps:$4 sm:$0xff]   ;;  %v4876_v57 = vld [vmem:[%s6472_s3 + $0x164] ss:$16 sps:$4 sm:$0xff]  }
 0x262   : > { %v4879_v58 = vld [vmem:[%s6472_s3 + $0x364] ss:$16 sps:$4 sm:$0xff]  }
 0x264   : > { %2461 = vmatpush2.bf16.msra.mxu0 %v4796_v0  ;;  %2502 = vmatpush2.bf16.msra.mxu1 %v4799_v1  ;;  %v4874_v0 = vld [vmem:[%s6472_s3 + $0x160] ss:$16 sps:$4 sm:$0xff]  }
 0x265   : > { %3152 = vmatprep.subr.bf16.mxu0 %v4804_v2  ;;  %3193 = vmatprep.subr.bf16.mxu1 %v4807_v3  ;;  %v4877_v1 = vld [vmem:[%s6472_s3 + $0x360] ss:$16 sps:$4 sm:$0xff]   ;;  %v4882_v2 = vld [vmem:[%s6472_s3 + $0x144] ss:$16 sps:$4 sm:$0xff]  }
 0x266   : > { %v4885_v3 = vld [vmem:[%s6472_s3 + $0x344] ss:$16 sps:$4 sm:$0xff]  }
 0x267   : > { %2463 = vmatmul.mubr.bf16.vlgmr.msra.gmra.mxu0 %v5641_v54  ;;  %2504 = vmatmul.mubr.bf16.vlgmr.msra.gmra.mxu1 %v5643_v55  ;;  %v4819_v54 = vld [vmem:[%s6472_s3 + $0x2a4] ss:$16 sps:$4 sm:$0xff]   ;;  %v4814_v55 = vld [vmem:[%s6472_s3 + $0xa0] ss:$16 sps:$4 sm:$0xff]  }
 0x268   : > { %3153 = vmatpush1.bf16.msra.mxu0 %v4802_v6  ;;  %3194 = vmatpush1.bf16.msra.mxu1 %v4805_v7  ;;  %v4888_v6 = vld [vmem:[%s6472_s3 + $0x124] ss:$16 sps:$4 sm:$0xff]  }
 0x269   : > { %3154 = vmatprep.subr.bf16.mxu0 %v4810_v8  ;;  %3195 = vmatprep.subr.bf16.mxu1 %v4813_v47  ;;  %v4891_v7 = vld [vmem:[%s6472_s3 + $0x324] ss:$16 sps:$4 sm:$0xff]   ;;  %v4886_v8 = vld [vmem:[%s6472_s3 + $0x120] ss:$16 sps:$4 sm:$0xff]  }
 0x26a   : > { %3184 = vmatprep.mubr.bf16.mxu0 %v5851_v49  ;;  %3225 = vmatprep.mubr.bf16.mxu1 %v5853_v15  ;;  %v4889_v47 = vld [vmem:[%s6472_s3 + $0x320] ss:$16 sps:$4 sm:$0xff]  }
 0x26c   : > { %3155 = vmatpush1.bf16.msra.mxu0 %v4808_v16  ;;  %3196 = vmatpush1.bf16.msra.mxu1 %v4811_v17  ;;  %v4894_v16 = vld [vmem:[%s6472_s3 + $0x104] ss:$16 sps:$4 sm:$0xff]  }
 0x26d   : > { %3156 = vmatprep.subr.bf16.mxu0 %v4816_v18  ;;  %3197 = vmatprep.subr.bf16.mxu1 %v4819_v54  ;;  %v4897_v17 = vld [vmem:[%s6472_s3 + $0x304] ss:$16 sps:$4 sm:$0xff]   ;;  %v1436_v18 = vmul.f32 %v5821_v59, %v5504_v46  ;;  %v1438_v54 = vmul.f32 %v5821_v59, %v5510_v48  ;;  %v4903_v46 = vld [vmem:[%s6472_s3 + $0x2ec] ss:$16 sps:$4 sm:$0xff]  }
 0x26f   : > { %v6043_v48 = vpack.c.bf16 %v1436_v18, %v1436_v18  ;;  %v6045_v59 = vpack.c.bf16 %v1438_v54, %v1438_v54  ;;  %v4981_v18 = vld [vmem:[%s6472_s3 + $0x34c] ss:$16 sps:$4 sm:$0xff]   ;;  %v4976_v54 = vld [vmem:[%s6472_s3 + $0x148] ss:$16 sps:$4 sm:$0xff]  }
 0x270   : > { %3157 = vmatpush1.bf16.msra.mxu0 %v4814_v55  ;;  %3198 = vmatpush1.bf16.msra.mxu1 %v4817_v19  ;;  %v4892_v55 = vld [vmem:[%s6472_s3 + $0x100] ss:$16 sps:$4 sm:$0xff]  }
 0x271   : > { %3158 = vmatprep.subr.bf16.mxu0 %v4822_v20  ;;  %3199 = vmatprep.subr.bf16.mxu1 %v4825_v21  ;;  %v4895_v19 = vld [vmem:[%s6472_s3 + $0x300] ss:$16 sps:$4 sm:$0xff]   ;;  %v4900_v20 = vld [vmem:[%s6472_s3 + $0xec] ss:$16 sps:$4 sm:$0xff]   ;;  %v4898_v21 = vld [vmem:[%s6472_s3 + $0xe8] ss:$16 sps:$4 sm:$0xff]  }
 0x274   : > { %3159 = vmatpush1.bf16.msra.mxu0 %v4820_v22  ;;  %3200 = vmatpush1.bf16.msra.mxu1 %v4823_v23  ;;  %v4901_v22 = vld [vmem:[%s6472_s3 + $0x2e8] ss:$16 sps:$4 sm:$0xff]   ;;  %v4906_v23 = vld [vmem:[%s6472_s3 + $0xcc] ss:$16 sps:$4 sm:$0xff]  }
 0x275   : > { %3160 = vmatprep.subr.bf16.mxu0 %v4828_v24  ;;  %3201 = vmatprep.subr.bf16.mxu1 %v4831_v25  ;;  %v4909_v24 = vld [vmem:[%s6472_s3 + $0x2cc] ss:$16 sps:$4 sm:$0xff]   ;;  %v4904_v25 = vld [vmem:[%s6472_s3 + $0xc8] ss:$16 sps:$4 sm:$0xff]  }
 0x278   : > { %3161 = vmatpush1.bf16.msra.mxu0 %v4826_v26  ;;  %3202 = vmatpush1.bf16.msra.mxu1 %v4829_v27  ;;  %v4907_v26 = vld [vmem:[%s6472_s3 + $0x2c8] ss:$16 sps:$4 sm:$0xff]   ;;  %v4912_v27 = vld [vmem:[%s6472_s3 + $0xac] ss:$16 sps:$4 sm:$0xff]  }
 0x279   : > { %3162 = vmatprep.subr.bf16.mxu0 %v4834_v10  ;;  %3203 = vmatprep.subr.bf16.mxu1 %v4837_v11  ;;  %v4910_v10 = vld [vmem:[%s6472_s3 + $0xa8] ss:$16 sps:$4 sm:$0xff]   ;;  %v4918_v11 = vld [vmem:[%s6472_s3 + $0x8c] ss:$16 sps:$4 sm:$0xff]  }
 0x27c   : > { %3163 = vmatpush1.bf16.msra.mxu0 %v4832_v28  ;;  %3204 = vmatpush1.bf16.msra.mxu1 %v4835_v29  ;;  %v4921_v28 = vld [vmem:[%s6472_s3 + $0x28c] ss:$16 sps:$4 sm:$0xff]   ;;  %v4916_v29 = vld [vmem:[%s6472_s3 + $0x88] ss:$16 sps:$4 sm:$0xff]  }
 0x27d   : > { %3164 = vmatprep.subr.bf16.mxu0 %v4840_v30  ;;  %3205 = vmatprep.subr.bf16.mxu1 %v4843_v31  ;;  %v4919_v30 = vld [vmem:[%s6472_s3 + $0x288] ss:$16 sps:$4 sm:$0xff]   ;;  %v4924_v31 = vld [vmem:[%s6472_s3 + $0x6c] ss:$16 sps:$4 sm:$0xff]  }
 0x280   : > { %3165 = vmatpush1.bf16.msra.mxu0 %v4838_v32  ;;  %3206 = vmatpush1.bf16.msra.mxu1 %v4841_v33  ;;  %v4927_v32 = vld [vmem:[%s6472_s3 + $0x26c] ss:$16 sps:$4 sm:$0xff]   ;;  %v4922_v33 = vld [vmem:[%s6472_s3 + $0x68] ss:$16 sps:$4 sm:$0xff]  }
 0x281   : > { %3166 = vmatprep.subr.bf16.mxu0 %v4846_v34  ;;  %3207 = vmatprep.subr.bf16.mxu1 %v4849_v35  ;;  %v4925_v34 = vld [vmem:[%s6472_s3 + $0x268] ss:$16 sps:$4 sm:$0xff]   ;;  %v4930_v35 = vld [vmem:[%s6472_s3 + $0x4c] ss:$16 sps:$4 sm:$0xff]  }
 0x284   : > { %3167 = vmatpush1.bf16.msra.mxu0 %v4844_v36  ;;  %3208 = vmatpush1.bf16.msra.mxu1 %v4847_v37  ;;  %v4933_v36 = vld [vmem:[%s6472_s3 + $0x24c] ss:$16 sps:$4 sm:$0xff]   ;;  %v4928_v37 = vld [vmem:[%s6472_s3 + $0x48] ss:$16 sps:$4 sm:$0xff]  }
 0x285   : > { %3168 = vmatprep.subr.bf16.mxu0 %v4852_v38  ;;  %3209 = vmatprep.subr.bf16.mxu1 %v4855_v39  ;;  %v4931_v38 = vld [vmem:[%s6472_s3 + $0x248] ss:$16 sps:$4 sm:$0xff]   ;;  %v4936_v39 = vld [vmem:[%s6472_s3 + $0x2c] ss:$16 sps:$4 sm:$0xff]  }
 0x288   : > { %3169 = vmatpush2.bf16.msra.mxu0 %v4850_v40  ;;  %3210 = vmatpush2.bf16.msra.mxu1 %v4853_v41  ;;  %v4939_v40 = vld [vmem:[%s6472_s3 + $0x22c] ss:$16 sps:$4 sm:$0xff]   ;;  %v4934_v41 = vld [vmem:[%s6472_s3 + $0x28] ss:$16 sps:$4 sm:$0xff]  }
 0x289   : > { %3170 = vmatprep.subr.bf16.mxu0 %v4858_v42  ;;  %3211 = vmatprep.subr.bf16.mxu1 %v4861_v43  ;;  %v4937_v42 = vld [vmem:[%s6472_s3 + $0x228] ss:$16 sps:$4 sm:$0xff]   ;;  %v4942_v43 = vld [vmem:[%s6472_s3 + $0xc] ss:$16 sps:$4 sm:$0xff]  }
 0x28c   : > { %3171 = vmatpush2.bf16.msra.mxu0 %v4856_v44  ;;  %3212 = vmatpush2.bf16.msra.mxu1 %v4859_v45  ;;  %v4945_v44 = vld [vmem:[%s6472_s3 + $0x20c] ss:$16 sps:$4 sm:$0xff]   ;;  %v4940_v45 = vld [vmem:[%s6472_s3 + $0x8] ss:$16 sps:$4 sm:$0xff]  }
 0x28d   : > { %3172 = vmatprep.subr.bf16.mxu0 %v4864_v50  ;;  %3213 = vmatprep.subr.bf16.mxu1 %v4867_v51  ;;  %v4943_v50 = vld [vmem:[%s6472_s3 + $0x208] ss:$16 sps:$4 sm:$0xff]   ;;  %v4948_v51 = vld [vmem:[%s6472_s3 + $0x1ec] ss:$16 sps:$4 sm:$0xff]  }
 0x290   : > { %3173 = vmatpush2.bf16.msra.mxu0 %v4862_v53  ;;  %3214 = vmatpush2.bf16.msra.mxu1 %v4865_v9  ;;  %v4951_v53 = vld [vmem:[%s6472_s3 + $0x3ec] ss:$16 sps:$4 sm:$0xff]   ;;  %v4946_v9 = vld [vmem:[%s6472_s3 + $0x1e8] ss:$16 sps:$4 sm:$0xff]  }
 0x291   : > { %3174 = vmatprep.subr.bf16.mxu0 %v4870_v12  ;;  %3215 = vmatprep.subr.bf16.mxu1 %v4873_v13  ;;  %v4949_v12 = vld [vmem:[%s6472_s3 + $0x3e8] ss:$16 sps:$4 sm:$0xff]   ;;  %v4954_v13 = vld [vmem:[%s6472_s3 + $0x1cc] ss:$16 sps:$4 sm:$0xff]  }
 0x294   : > { %3175 = vmatpush2.bf16.msra.mxu0 %v4868_v14  ;;  %3216 = vmatpush2.bf16.msra.mxu1 %v4871_v56  ;;  %v4957_v14 = vld [vmem:[%s6472_s3 + $0x3cc] ss:$16 sps:$4 sm:$0xff]   ;;  %v4952_v56 = vld [vmem:[%s6472_s3 + $0x1c8] ss:$16 sps:$4 sm:$0xff]  }
 0x295   : > { %3176 = vmatprep.subr.bf16.mxu0 %v4876_v57  ;;  %3217 = vmatprep.subr.bf16.mxu1 %v4879_v58  ;;  %v4955_v57 = vld [vmem:[%s6472_s3 + $0x3c8] ss:$16 sps:$4 sm:$0xff]   ;;  %v4960_v58 = vld [vmem:[%s6472_s3 + $0x1ac] ss:$16 sps:$4 sm:$0xff]  }
 0x298   : > { %3177 = vmatpush2.bf16.msra.mxu0 %v4874_v0  ;;  %3218 = vmatpush2.bf16.msra.mxu1 %v4877_v1  ;;  %v4963_v0 = vld [vmem:[%s6472_s3 + $0x3ac] ss:$16 sps:$4 sm:$0xff]   ;;  %v4958_v1 = vld [vmem:[%s6472_s3 + $0x1a8] ss:$16 sps:$4 sm:$0xff]  }
 0x299   : > { %3178 = vmatprep.subr.bf16.mxu0 %v4882_v2  ;;  %3219 = vmatprep.subr.bf16.mxu1 %v4885_v3  ;;  %v4961_v2 = vld [vmem:[%s6472_s3 + $0x3a8] ss:$16 sps:$4 sm:$0xff]   ;;  %v4966_v3 = vld [vmem:[%s6472_s3 + $0x18c] ss:$16 sps:$4 sm:$0xff]  }
 0x29c   : > { %3179 = vmatpush2.bf16.msra.mxu0 %v4880_v4  ;;  %3220 = vmatpush2.bf16.msra.mxu1 %v4883_v5  ;;  %v4969_v4 = vld [vmem:[%s6472_s3 + $0x38c] ss:$16 sps:$4 sm:$0xff]   ;;  %v4964_v5 = vld [vmem:[%s6472_s3 + $0x188] ss:$16 sps:$4 sm:$0xff]  }
 0x29d   : > { %3180 = vmatprep.subr.bf16.mxu0 %v4888_v6  ;;  %3221 = vmatprep.subr.bf16.mxu1 %v4891_v7  ;;  %v4967_v6 = vld [vmem:[%s6472_s3 + $0x388] ss:$16 sps:$4 sm:$0xff]   ;;  %v4972_v7 = vld [vmem:[%s6472_s3 + $0x16c] ss:$16 sps:$4 sm:$0xff]  }
 0x2a0   : > { %3181 = vmatpush2.bf16.msra.mxu0 %v4886_v8  ;;  %3222 = vmatpush2.bf16.msra.mxu1 %v4889_v47  ;;  %v4975_v8 = vld [vmem:[%s6472_s3 + $0x36c] ss:$16 sps:$4 sm:$0xff]   ;;  %v4970_v47 = vld [vmem:[%s6472_s3 + $0x168] ss:$16 sps:$4 sm:$0xff]  }
 0x2a1   : > { %3182 = vmatprep.subr.bf16.mxu0 %v4894_v16  ;;  %3223 = vmatprep.subr.bf16.mxu1 %v4897_v17  ;;  %v4973_v16 = vld [vmem:[%s6472_s3 + $0x368] ss:$16 sps:$4 sm:$0xff]   ;;  %v4978_v17 = vld [vmem:[%s6472_s3 + $0x14c] ss:$16 sps:$4 sm:$0xff]  }
 0x2a4   : > { %3183 = vmatpush2.bf16.msra.mxu0 %v4892_v55  ;;  %3224 = vmatpush2.bf16.msra.mxu1 %v4895_v19  ;;  %v4979_v55 = vld [vmem:[%s6472_s3 + $0x348] ss:$16 sps:$4 sm:$0xff]   ;;  %v4984_v19 = vld [vmem:[%s6472_s3 + $0x12c] ss:$16 sps:$4 sm:$0xff]  }
 0x2a5   : > { %3234 = vmatprep.subr.bf16.mxu0 %v4900_v20  ;;  %3275 = vmatprep.subr.bf16.mxu1 %v4903_v46  ;;  %v4987_v20 = vld [vmem:[%s6472_s3 + $0x32c] ss:$16 sps:$4 sm:$0xff]   ;;  %v4982_v46 = vld [vmem:[%s6472_s3 + $0x128] ss:$16 sps:$4 sm:$0xff]  }
 0x2a7   : > { %3185 = vmatmul.mubr.bf16.vlgmr.msra.gmra.mxu0 %v6043_v48  ;;  %3226 = vmatmul.mubr.bf16.vlgmr.msra.gmra.mxu1 %v6045_v59 }
 0x2a8   : > { %3235 = vmatpush1.bf16.msra.mxu0 %v4898_v21  ;;  %3266 = vmatprep.mubr.bf16.mxu0 %v5851_v49  ;;  %v4915_v49 = vld [vmem:[%s6472_s3 + $0x2ac] ss:$16 sps:$4 sm:$0xff]   ;;  %v4985_v21 = vld [vmem:[%s6472_s3 + $0x328] ss:$16 sps:$4 sm:$0xff]  }
 0x2a9   : > { %3276 = vmatpush1.bf16.msra.mxu1 %v4901_v22  ;;  %3307 = vmatprep.mubr.bf16.mxu1 %v5853_v15  ;;  %v4913_v15 = vld [vmem:[%s6472_s3 + $0x2a8] ss:$16 sps:$4 sm:$0xff]   ;;  %v4990_v22 = vld [vmem:[%s6472_s3 + $0x10c] ss:$16 sps:$4 sm:$0xff]  }
 0x2aa   : > { %3236 = vmatprep.subr.bf16.mxu0 %v4906_v23  ;;  %3277 = vmatprep.subr.bf16.mxu1 %v4909_v24  ;;  %v4993_v23 = vld [vmem:[%s6472_s3 + $0x30c] ss:$16 sps:$4 sm:$0xff]   ;;  %v4988_v24 = vld [vmem:[%s6472_s3 + $0x108] ss:$16 sps:$4 sm:$0xff]  }
 0x2ac   : > { %3237 = vmatpush1.bf16.msra.mxu0 %v4904_v25  ;;  %v4991_v25 = vld [vmem:[%s6472_s3 + $0x308] ss:$16 sps:$4 sm:$0xff]  }
 0x2ad   : > { %3278 = vmatpush1.bf16.msra.mxu1 %v4907_v26  ;;  %3238 = vmatprep.subr.bf16.mxu0 %v4912_v27  ;;  %v4996_v26 = vld [vmem:[%s6474_s5 + $0x74] ss:$8 sps:$4 sm:$0xff]   ;;  %v4994_v27 = vld [vmem:[%s6474_s5 + $0x70] ss:$8 sps:$4 sm:$0xff]  }
 0x2ae   : > { %3279 = vmatprep.subr.bf16.mxu1 %v4915_v49  ;;  %v4999_v49 = vld [vmem:[%s6474_s5 + $0x64] ss:$8 sps:$4 sm:$0xff]  }
 0x2b0   : > { %3239 = vmatpush1.bf16.msra.mxu0 %v4910_v10 }
 0x2b1   : > { %3280 = vmatpush1.bf16.msra.mxu1 %v4913_v15  ;;  %3240 = vmatprep.subr.bf16.mxu0 %v4918_v11 }
 0x2b2   : > { %3281 = vmatprep.subr.bf16.mxu1 %v4921_v28  ;;  %v4997_v28 = vld [vmem:[%s6474_s5 + $0x60] ss:$8 sps:$4 sm:$0xff]  }
 0x2b4   : > { %3241 = vmatpush1.bf16.msra.mxu0 %v4916_v29 }
 0x2b5   : > { %3282 = vmatpush1.bf16.msra.mxu1 %v4919_v30  ;;  %3242 = vmatprep.subr.bf16.mxu0 %v4924_v31  ;;  %v5002_v31 = vld [vmem:[%s6474_s5 + $0x54] ss:$8 sps:$4 sm:$0xff]  }
 0x2b6   : > { %3283 = vmatprep.subr.bf16.mxu1 %v4927_v32 }
 0x2b8   : > { %3243 = vmatpush1.bf16.msra.mxu0 %v4922_v33 }
 0x2b9   : > { %3284 = vmatpush1.bf16.msra.mxu1 %v4925_v34  ;;  %3244 = vmatprep.subr.bf16.mxu0 %v4930_v35 }
 0x2ba   : > { %3285 = vmatprep.subr.bf16.mxu1 %v4933_v36  ;;  %v5005_v36 = vld [vmem:[%s6474_s5 + $0x44] ss:$8 sps:$4 sm:$0xff]  }
 0x2bc   : > { %3245 = vmatpush1.bf16.msra.mxu0 %v4928_v37  ;;  %v5003_v37 = vld [vmem:[%s6474_s5 + $0x40] ss:$8 sps:$4 sm:$0xff]  }
 0x2bd   : > { %3286 = vmatpush1.bf16.msra.mxu1 %v4931_v38  ;;  %3246 = vmatprep.subr.bf16.mxu0 %v4936_v39  ;;  %v5008_v38 = vld [vmem:[%s6474_s5 + $0x34] ss:$8 sps:$4 sm:$0xff]   ;;  %v5006_v39 = vld [vmem:[%s6474_s5 + $0x30] ss:$8 sps:$4 sm:$0xff]  }
 0x2be   : > { %3287 = vmatprep.subr.bf16.mxu1 %v4939_v40  ;;  %v5044_v40 = vld [vmem:[%s6474_s5 + $0x174] ss:$8 sps:$4 sm:$0xff]  }
 0x2c0   : > { %3247 = vmatpush1.bf16.msra.mxu0 %v4934_v41  ;;  %v5011_v41 = vld [vmem:[%s6474_s5 + $0x24] ss:$8 sps:$4 sm:$0xff]  }
 0x2c1   : > { %3288 = vmatpush1.bf16.msra.mxu1 %v4937_v42  ;;  %3248 = vmatprep.subr.bf16.mxu0 %v4942_v43  ;;  %v5042_v42 = vld [vmem:[%s6474_s5 + $0x170] ss:$8 sps:$4 sm:$0xff]   ;;  %v5047_v43 = vld [vmem:[%s6474_s5 + $0x164] ss:$8 sps:$4 sm:$0xff]  }
 0x2c2   : > { %3289 = vmatprep.subr.bf16.mxu1 %v4945_v44  ;;  %v5045_v44 = vld [vmem:[%s6474_s5 + $0x160] ss:$8 sps:$4 sm:$0xff]  }
 0x2c4   : > { %3249 = vmatpush1.bf16.msra.mxu0 %v4940_v45  ;;  %v5009_v45 = vld [vmem:[%s6474_s5 + $0x20] ss:$8 sps:$4 sm:$0xff]  }
 0x2c5   : > { %3290 = vmatpush1.bf16.msra.mxu1 %v4943_v50  ;;  %3250 = vmatprep.subr.bf16.mxu0 %v4948_v51  ;;  %v5050_v50 = vld [vmem:[%s6474_s5 + $0x154] ss:$8 sps:$4 sm:$0xff]  }
 0x2c6   : > { %3291 = vmatprep.subr.bf16.mxu1 %v4951_v53  ;;  %v5014_v51 = vld [vmem:[%s6474_s5 + $0x14] ss:$8 sps:$4 sm:$0xff]   ;;  %v5048_v53 = vld [vmem:[%s6474_s5 + $0x150] ss:$8 sps:$4 sm:$0xff]  }
 0x2c8   : > { %3251 = vmatpush2.bf16.msra.mxu0 %v4946_v9  ;;  %v5012_v9 = vld [vmem:[%s6474_s5 + $0x10] ss:$8 sps:$4 sm:$0xff]  }
 0x2c9   : > { %3292 = vmatpush2.bf16.msra.mxu1 %v4949_v12  ;;  %3252 = vmatprep.subr.bf16.mxu0 %v4954_v13  ;;  %v5053_v12 = vld [vmem:[%s6474_s5 + $0x144] ss:$8 sps:$4 sm:$0xff]  }
 0x2ca   : > { %3293 = vmatprep.subr.bf16.mxu1 %v4957_v14  ;;  %v5017_v13 = vld [vmem:[%s6474_s5 + $0x4] ss:$8 sps:$4 sm:$0xff]   ;;  %v5051_v14 = vld [vmem:[%s6474_s5 + $0x140] ss:$8 sps:$4 sm:$0xff]  }
 0x2cc   : > { %3253 = vmatpush2.bf16.msra.mxu0 %v4952_v56  ;;  %v5015_v56 = vld [vmem:[%s6474_s5] ss:$8 sps:$4 sm:$0xff]  }
 0x2cd   : > { %3294 = vmatpush2.bf16.msra.mxu1 %v4955_v57  ;;  %3254 = vmatprep.subr.bf16.mxu0 %v4960_v58  ;;  %v5056_v57 = vld [vmem:[%s6474_s5 + $0x134] ss:$8 sps:$4 sm:$0xff]  }
 0x2ce   : > { %3295 = vmatprep.subr.bf16.mxu1 %v4963_v0  ;;  %v5020_v58 = vld [vmem:[%s6474_s5 + $0xf4] ss:$8 sps:$4 sm:$0xff]   ;;  %v5054_v0 = vld [vmem:[%s6474_s5 + $0x130] ss:$8 sps:$4 sm:$0xff]  }
 0x2d0   : > { %3255 = vmatpush2.bf16.msra.mxu0 %v4958_v1  ;;  %v5018_v1 = vld [vmem:[%s6474_s5 + $0xf0] ss:$8 sps:$4 sm:$0xff]  }
 0x2d1   : > { %3296 = vmatpush2.bf16.msra.mxu1 %v4961_v2  ;;  %3256 = vmatprep.subr.bf16.mxu0 %v4966_v3  ;;  %v5059_v2 = vld [vmem:[%s6474_s5 + $0x124] ss:$8 sps:$4 sm:$0xff]  }
 0x2d2   : > { %3297 = vmatprep.subr.bf16.mxu1 %v4969_v4  ;;  %v5023_v3 = vld [vmem:[%s6474_s5 + $0xe4] ss:$8 sps:$4 sm:$0xff]   ;;  %v5057_v4 = vld [vmem:[%s6474_s5 + $0x120] ss:$8 sps:$4 sm:$0xff]  }
 0x2d4   : > { %3257 = vmatpush2.bf16.msra.mxu0 %v4964_v5  ;;  %v5021_v5 = vld [vmem:[%s6474_s5 + $0xe0] ss:$8 sps:$4 sm:$0xff]  }
 0x2d5   : > { %3298 = vmatpush2.bf16.msra.mxu1 %v4967_v6  ;;  %3258 = vmatprep.subr.bf16.mxu0 %v4972_v7  ;;  %v5062_v6 = vld [vmem:[%s6474_s5 + $0x114] ss:$8 sps:$4 sm:$0xff]  }
 0x2d6   : > { %3299 = vmatprep.subr.bf16.mxu1 %v4975_v8  ;;  %v5026_v7 = vld [vmem:[%s6474_s5 + $0xd4] ss:$8 sps:$4 sm:$0xff]   ;;  %v5060_v8 = vld [vmem:[%s6474_s5 + $0x110] ss:$8 sps:$4 sm:$0xff]  }
 0x2d8   : > { %3259 = vmatpush2.bf16.msra.mxu0 %v4970_v47  ;;  %v5024_v47 = vld [vmem:[%s6474_s5 + $0xd0] ss:$8 sps:$4 sm:$0xff]  }
 0x2d9   : > { %3300 = vmatpush2.bf16.msra.mxu1 %v4973_v16  ;;  %3260 = vmatprep.subr.bf16.mxu0 %v4978_v17  ;;  %v5065_v16 = vld [vmem:[%s6474_s5 + $0x104] ss:$8 sps:$4 sm:$0xff]  }
 0x2da   : > { %3301 = vmatprep.subr.bf16.mxu1 %v4981_v18  ;;  %v5029_v17 = vld [vmem:[%s6474_s5 + $0xc4] ss:$8 sps:$4 sm:$0xff]   ;;  %v5063_v18 = vld [vmem:[%s6474_s5 + $0x100] ss:$8 sps:$4 sm:$0xff]  }
 0x2dc   : > { %3261 = vmatpush2.bf16.msra.mxu0 %v4976_v54  ;;  %v5027_v54 = vld [vmem:[%s6474_s5 + $0xc0] ss:$8 sps:$4 sm:$0xff]  }
 0x2dd   : > { %3302 = vmatpush2.bf16.msra.mxu1 %v4979_v55  ;;  %3262 = vmatprep.subr.bf16.mxu0 %v4984_v19  ;;  %v5068_v55 = vld [vmem:[%s6474_s5 + $0x1f4] ss:$8 sps:$4 sm:$0xff]  }
 0x2de   : > { %3303 = vmatprep.subr.bf16.mxu1 %v4987_v20  ;;  %v5032_v19 = vld [vmem:[%s6474_s5 + $0xb4] ss:$8 sps:$4 sm:$0xff]   ;;  %v5066_v20 = vld [vmem:[%s6474_s5 + $0x1f0] ss:$8 sps:$4 sm:$0xff]  }
 0x2e0   : > { %3263 = vmatpush2.bf16.msra.mxu0 %v4982_v46  ;;  %v5030_v46 = vld [vmem:[%s6474_s5 + $0xb0] ss:$8 sps:$4 sm:$0xff]  }
 0x2e1   : > { %3304 = vmatpush2.bf16.msra.mxu1 %v4985_v21  ;;  %3264 = vmatprep.subr.bf16.mxu0 %v4990_v22  ;;  %v5071_v21 = vld [vmem:[%s6474_s5 + $0x1e4] ss:$8 sps:$4 sm:$0xff]  }
 0x2e2   : > { %3305 = vmatprep.subr.bf16.mxu1 %v4993_v23  ;;  %v5035_v22 = vld [vmem:[%s6474_s5 + $0xa4] ss:$8 sps:$4 sm:$0xff]   ;;  %v5069_v23 = vld [vmem:[%s6474_s5 + $0x1e0] ss:$8 sps:$4 sm:$0xff]  }
 0x2e4   : > { %3265 = vmatpush2.bf16.msra.mxu0 %v4988_v24  ;;  %v5033_v24 = vld [vmem:[%s6474_s5 + $0xa0] ss:$8 sps:$4 sm:$0xff]  }
 0x2e5   : > { %3306 = vmatpush2.bf16.msra.mxu1 %v4991_v25  ;;  %3746 = vmatprep.subr.bf16.mxu0 %v4996_v26  ;;  %v5074_v25 = vld [vmem:[%s6474_s5 + $0x1d4] ss:$8 sps:$4 sm:$0xff]  }
 0x2e6   : > { %3787 = vmatprep.subr.bf16.mxu1 %v5044_v40  ;;  %v5038_v26 = vld [vmem:[%s6474_s5 + $0x94] ss:$8 sps:$4 sm:$0xff]  }
 0x2e7   : > { %3267 = vmatmul.mubr.bf16.vlgmr.msra.gmra.mxu0 %v6043_v48  ;;  %v2382_v10 = vpop.f32.mrf.mxu0  ;;  %v2423_v15 = vpop.f32.mrf.mxu1 }
 0x2e8   : > { %3308 = vmatmul.mubr.bf16.vlgmr.msra.gmra.mxu1 %v6045_v59  ;;  %v6248_v11 = vadd.f32 %v2423_v15, %v2382_v10  ;;  %3747 = vmatpush1.bf16.msra.mxu0 %v4994_v27  ;;  %v5000_v59 = vld [vmem:[%s6474_s5 + $0x50] ss:$8 sps:$4 sm:$0xff]   ;;  %v5077_v10 = vld [vmem:[%s6474_s5 + $0x1c4] ss:$8 sps:$4 sm:$0xff]  }
 0x2e9   : > { %v2384_v29 = vpop.f32.mrf.mxu0  ;;  %v2425_v30 = vpop.f32.mrf.mxu1  ;;  %3748 = vmatprep.subr.bf16.mxu0 %v4999_v49  ;;  %3788 = vmatpush1.bf16.msra.mxu1 %v5042_v42  ;;  %v5072_v27 = vld [vmem:[%s6474_s5 + $0x1d0] ss:$8 sps:$4 sm:$0xff]   ;;  %v5041_v15 = vld [vmem:[%s6474_s5 + $0x84] ss:$8 sps:$4 sm:$0xff]  }
 0x2ea   : > { %v6256_v32 = vadd.f32 %v2425_v30, %v2384_v29  ;;  %3789 = vmatprep.subr.bf16.mxu1 %v5047_v43  ;;  %v5036_v49 = vld [vmem:[%s6474_s5 + $0x90] ss:$8 sps:$4 sm:$0xff]   ;;  %v5039_v29 = vld [vmem:[%s6474_s5 + $0x80] ss:$8 sps:$4 sm:$0xff]   ;;  %v5080_v30 = vld [vmem:[%s6474_s5 + $0x1b4] ss:$8 sps:$4 sm:$0xff]  }
 0x2eb   : > { %v2386_v48 = vpop.f32.mrf.mxu0  ;;  %v2427_v33 = vpop.f32.mrf.mxu1 }
 0x2ec   : > { %3749 = vmatpush1.bf16.msra.mxu0 %v4997_v28  ;;  %v5075_v28 = vld [vmem:[%s6474_s5 + $0x1c0] ss:$8 sps:$4 sm:$0xff]  }
 0x2ed   : > { %v2387_v34 = vpop.f32.mrf.mxu0  ;;  %v2428_v35 = vpop.f32.mrf.mxu1  ;;  %3750 = vmatprep.subr.bf16.mxu0 %v5002_v31  ;;  %3790 = vmatpush1.bf16.msra.mxu1 %v5045_v44  ;;  %v5078_v31 = vld [vmem:[%s6474_s5 + $0x1b0] ss:$8 sps:$4 sm:$0xff]  }
 0x2ee   : > { %3791 = vmatprep.subr.bf16.mxu1 %v5050_v50  ;;  %v5083_v34 = vld [vmem:[%s6474_s5 + $0x1a4] ss:$8 sps:$4 sm:$0xff]   ;;  %v5084_v44 = vld [vmem:[%s6474_s5 + $0x190] ss:$8 sps:$4 sm:$0xff]   ;;  %v5087_v50 = vld [vmem:[%s6474_s5 + $0x180] ss:$8 sps:$4 sm:$0xff]  }
 0x2f0   : > { %3751 = vmatpush1.bf16.msra.mxu0 %v5000_v59 }
 0x2f1   : > { %3752 = vmatprep.subr.bf16.mxu0 %v5005_v36  ;;  %3792 = vmatpush1.bf16.msra.mxu1 %v5048_v53 }
 0x2f2   : > { %3793 = vmatprep.subr.bf16.mxu1 %v5053_v12 }
 0x2f4   : > { %3753 = vmatpush1.bf16.msra.mxu0 %v5003_v37  ;;  %v5081_v37 = vld [vmem:[%s6474_s5 + $0x1a0] ss:$8 sps:$4 sm:$0xff]  }
 0x2f5   : > { %3754 = vmatprep.subr.bf16.mxu0 %v5008_v38  ;;  %3794 = vmatpush1.bf16.msra.mxu1 %v5051_v14 }
 0x2f6   : > { %3795 = vmatprep.subr.bf16.mxu1 %v5056_v57 }
 0x2f8   : > { %3755 = vmatpush1.bf16.msra.mxu0 %v5006_v39 }
 0x2f9   : > { %3756 = vmatprep.subr.bf16.mxu0 %v5011_v41  ;;  %3796 = vmatpush1.bf16.msra.mxu1 %v5054_v0  ;;  %v5086_v41 = vld [vmem:[%s6474_s5 + $0x194] ss:$8 sps:$4 sm:$0xff]  }
 0x2fa   : > { %3797 = vmatprep.subr.bf16.mxu1 %v5059_v2 }
 0x2fc   : > { %3757 = vmatpush1.bf16.msra.mxu0 %v5009_v45  ;;  %v5089_v45 = vld [vmem:[%s6474_s5 + $0x184] ss:$8 sps:$4 sm:$0xff]  }
 0x2fd   : > { %3758 = vmatprep.subr.bf16.mxu0 %v5014_v51  ;;  %3798 = vmatpush1.bf16.msra.mxu1 %v5057_v4  ;;  %v3316_v51 = vld [vmem:[%s6473_s4] sm:$0xf] }
 0x2fe   : > { %3799 = vmatprep.subr.bf16.mxu1 %v5062_v6  ;;  %v3325_v0 = vrot.slane %v3316_v51, %v5384_v61 }
 0x300   : > { %3759 = vmatpush1.bf16.msra.mxu0 %v5012_v9 }
 0x301   : > { %3760 = vmatprep.subr.bf16.mxu0 %v5017_v13  ;;  %3800 = vmatpush1.bf16.msra.mxu1 %v5060_v8  ;;  %v3321_v13 = vrot.slane %v3316_v51, %v5381_v60 }
 0x302   : > { %3801 = vmatprep.subr.bf16.mxu1 %v5065_v16 }
 0x304   : > { %3761 = vmatpush1.bf16.msra.mxu0 %v5015_v56 }
 0x305   : > { %3762 = vmatprep.subr.bf16.mxu0 %v5020_v58  ;;  %3802 = vmatpush1.bf16.msra.mxu1 %v5063_v18 }
 0x306   : > { %3803 = vmatprep.subr.bf16.mxu1 %v5068_v55 }
 0x308   : > { %3763 = vmatpush2.bf16.msra.mxu0 %v5018_v1 }
 0x309   : > { %3764 = vmatprep.subr.bf16.mxu0 %v5023_v3  ;;  %3804 = vmatpush2.bf16.msra.mxu1 %v5066_v20 }
 0x30a   : > { %3805 = vmatprep.subr.bf16.mxu1 %v5071_v21  ;;  %v3333_v21 = vrot.slane %v3316_v51, %v1400_v63  ;;  %v3419_v63 = vrot.slane %v3414_v52, %v5381_v60 }
 0x30c   : > { %3765 = vmatpush2.bf16.msra.mxu0 %v5021_v5 }
 0x30d   : > { %3766 = vmatprep.subr.bf16.mxu0 %v5026_v7  ;;  %3806 = vmatpush2.bf16.msra.mxu1 %v5069_v23 }
 0x30e   : > { %3807 = vmatprep.subr.bf16.mxu1 %v5074_v25 }
 0x310   : > { %3767 = vmatpush2.bf16.msra.mxu0 %v5024_v47 }
 0x311   : > { %3768 = vmatprep.subr.bf16.mxu0 %v5029_v17  ;;  %3808 = vmatpush2.bf16.msra.mxu1 %v5072_v27 }
 0x312   : > { %3809 = vmatprep.subr.bf16.mxu1 %v5077_v10 }
 0x314   : > { %3769 = vmatpush2.bf16.msra.mxu0 %v5027_v54 }
 0x315   : > { %3770 = vmatprep.subr.bf16.mxu0 %v5032_v19  ;;  %3810 = vmatpush2.bf16.msra.mxu1 %v5075_v28 }
 0x316   : > { %3811 = vmatprep.subr.bf16.mxu1 %v5080_v30 }
 0x318   : > { %3771 = vmatpush2.bf16.msra.mxu0 %v5030_v46 }
 0x319   : > { %3772 = vmatprep.subr.bf16.mxu0 %v5035_v22  ;;  %3812 = vmatpush2.bf16.msra.mxu1 %v5078_v31 }
 0x31a   : > { %3813 = vmatprep.subr.bf16.mxu1 %v5083_v34 }
 0x31c   : > { %3773 = vmatpush2.bf16.msra.mxu0 %v5033_v24 }
 0x31d   : > { %3774 = vmatprep.subr.bf16.mxu0 %v5038_v26  ;;  %3814 = vmatpush2.bf16.msra.mxu1 %v5081_v37 }
 0x31e   : > { %3815 = vmatprep.subr.bf16.mxu1 %v5086_v41 }
 0x320   : > { %3775 = vmatpush2.bf16.msra.mxu0 %v5036_v49 }
 0x321   : > { %3776 = vmatprep.subr.bf16.mxu0 %v5041_v15  ;;  %3816 = vmatpush2.bf16.msra.mxu1 %v5084_v44 }
 0x322   : > { %3817 = vmatprep.subr.bf16.mxu1 %v5089_v45 }
 0x324   : > { %3777 = vmatpush2.bf16.msra.mxu0 %v5039_v29 }
 0x325   : > { %3818 = vmatpush2.bf16.msra.mxu1 %v5087_v50 }
 0x327   : > { %v2464_v48 = vpop.f32.mrf.mxu0  ;;  %v2505_v33 = vpop.f32.mrf.mxu1 }
 0x328   : > { %v2506_v59 = vadd.f32 %v2505_v33, %v2464_v48  ;;  %v3423_v33 = vrot.slane %v3414_v52, %v5384_v61 }
 0x329   : > { %v2466_v35 = vpop.f32.mrf.mxu0  ;;  %v2507_v36 = vpop.f32.mrf.mxu1 }
 0x32a   : > { %v2508_v38 = vadd.f32 %v2507_v36, %v2466_v35  ;;  %v3830_v35 = vld [vmem:[%s6476_s7] sm:$0x3] }
 0x32b   : > { %v2468_v39 = vpop.f32.mrf.mxu0  ;;  %v2509_v40 = vpop.f32.mrf.mxu1  ;;  %v3835_v41 = vrot.slane %v3830_v35, %v5381_v60 }
 0x32d   : > { %v2469_v42 = vpop.f32.mrf.mxu0  ;;  %v2510_v43 = vpop.f32.mrf.mxu1 }
 0x32e   : > { %v3839_v42 = vrot.slane %v3830_v35, %v5384_v61 }
 0x367   : > { %v3186_v53 = vpop.f32.mrf.mxu0  ;;  %v3227_v9 = vpop.f32.mrf.mxu1 }
 0x368   : > { %v3187_v12 = vadd.f32 %v3186_v53, %v6248_v11 }
 0x369   : > { %v3188_v14 = vpop.f32.mrf.mxu0  ;;  %v3229_v56 = vpop.f32.mrf.mxu1 }
 0x36a   : > { %v3228_v57 = vadd.f32 %v3227_v9, %v3187_v12  ;;  %v3189_v58 = vadd.f32 %v3188_v14, %v6256_v32  ;;  %v3329_v32 = vrot.slane %v3316_v51, %v1396_v62  ;;  %v5123_v9 = vmov 0   ;;  %v4378_v12 = vld [vmem:[#allocation3] ss:$0 sm:$0xff] }
 0x36b   : > { %v3190_v1 = vpop.f32.mrf.mxu0  ;;  %v3231_v2 = vpop.f32.mrf.mxu1  ;;  %4608 = vset.pattern.permute.xlu1 %v5123_v9  ;;  %4609 = vset.pattern.permute.xlu0 %v5123_v9 }
 0x36c   : > { %v3338_v3 = vadd.f32 %v3321_v13, %v3228_v57  ;;  %v3230_v4 = vadd.f32 %v3229_v56, %v3189_v58 }
 0x36d   : > { %v3191_v5 = vpop.f32.mrf.mxu0  ;;  %v3232_v6 = vpop.f32.mrf.mxu1 }
 0x36e   : > { %v3339_v7 = vadd.f32 %v3325_v0, %v3230_v4  ;;  %v3342_v8 = vmax.f32 %v3338_v3, 0.0 }
 0x370   : > { %v3343_v47 = vmax.f32 %v3339_v7, 0.0  ;;  %v3346_v11 = vpack.c.bf16 %v3342_v8, %v3342_v8 }
 0x372   : > { %v3347_v16 = vpack.c.bf16 %v3343_v47, %v3343_v47 }
 0x374   : > { %3778 = vmatprep.mubr.bf16.mxu0 %v3347_v16 }
 0x375   : > { %3779 = vmatmul.mubr.bf16.vlgmr.msra.gmra.mxu0 %v3346_v11 }
 0x3a7   : > { %v3268_v17 = vpop.f32.mrf.mxu0 }
 0x3a8   : > { %v3269_v18 = vadd.f32 %v3268_v17, %v2506_v59  ;;  %v3309_v54 = vpop.f32.mrf.mxu1 }
 0x3a9   : > { %v3270_v55 = vpop.f32.mrf.mxu0 }
 0x3aa   : > { %v3310_v19 = vadd.f32 %v3309_v54, %v3269_v18  ;;  %v3271_v20 = vadd.f32 %v3270_v55, %v2508_v38  ;;  %v3311_v46 = vpop.f32.mrf.mxu1 }
 0x3ab   : > { %v3272_v22 = vpop.f32.mrf.mxu0 }
 0x3ac   : > { %v3340_v23 = vadd.f32 %v3329_v32, %v3310_v19  ;;  %v3312_v24 = vadd.f32 %v3311_v46, %v3271_v20  ;;  %v3313_v25 = vpop.f32.mrf.mxu1 }
 0x3ad   : > { %v3273_v26 = vpop.f32.mrf.mxu0 }
 0x3ae   : > { %v3341_v27 = vadd.f32 %v3333_v21, %v3312_v24  ;;  %v3314_v49 = vpop.f32.mrf.mxu1  ;;  %v3344_v10 = vmax.f32 %v3340_v23, 0.0 }
 0x3b0   : > { %v3345_v15 = vmax.f32 %v3341_v27, 0.0  ;;  %v3348_v29 = vpack.c.bf16 %v3344_v10, %v3344_v10 }
 0x3b2   : > { %v3349_v28 = vpack.c.bf16 %v3345_v15, %v3345_v15 }
 0x3b4   : > { %3819 = vmatprep.mubr.bf16.mxu1 %v3349_v28 }
 0x3b5   : > { %3820 = vmatmul.mubr.bf16.vlgmr.msra.gmra.mxu1 %v3348_v29 }
 0x435   : > { %v3780_v62 = vpop.f32.mrf.mxu0 }
 0x436   : > { %v3781_v59 = vadd.f32 %v3780_v62, %v3419_v63 }
 0x437   : > { %v3782_v30 = vpop.f32.mrf.mxu0 }
 0x438   : > { %v3783_v36 = vadd.f32 %v3782_v30, %v3423_v33 }
 0x439   : > { %v3784_v31 = vpop.f32.mrf.mxu0 }
 0x43b   : > { %v3785_v48 = vpop.f32.mrf.mxu0 }
 0x475   : > { %v3821_v34 = vpop.f32.mrf.mxu1 }
 0x476   : > { %v3822_v37 = vadd.f32 %v3821_v34, %v3781_v59 }
 0x477   : > { %v3823_v38 = vpop.f32.mrf.mxu1 }
 0x478   : > { %v3828_v39 = vmax.f32 %v3822_v37, 0.0  ;;  %v3824_v40 = vadd.f32 %v3823_v38, %v3783_v36 }
 0x479   : > { %v3825_v43 = vpop.f32.mrf.mxu1 }
 0x47a   : > { %v3829_v44 = vmax.f32 %v3824_v40, 0.0  ;;  %v3842_v50 = vmul.f32 %v3835_v41, %v3828_v39 }
 0x47b   : > { %v3826_v45 = vpop.f32.mrf.mxu1 }
 0x47c   : > { %v3843_v51 = vmul.f32 %v3839_v42, %v3829_v44 }
 0x47e   : > { %v3844_v53 = vadd.f32 %v3843_v51, %v3842_v50 }
 0x480   : > { %3845 = vadd.xlane.f32.xlu1 %v3844_v53 }
 0x509   : > { %v3846_v13 = vpop.xlane.xlu1 %3845 }
 0x50a   : > { %v3854_v14 = vadd.f32 %v4378_v12, %v3846_v13 }
 0x50c   : > { %v4379_v56 = vmul.f32 -1.442695, %v3854_v14 }
 0x50e   : > { %5094 = vpow2.f32 %v4379_v56 }
 0x51b   : > { %v5095_v57 = vpop.eup %5094 }
 0x51c   : > { %v3858_v58 = vadd.f32 1.0, %v5095_v57 }
 0x51e   : > { %5096 = vrcp.f32 %v3858_v58 }
 0x52b   : > { %v5097_v60 = vpop.eup %5096 }
 0x52c   : > { %3863 = vperm.xlu1 %4608, %v5097_v60  }
 0x5a7   : > { %v3864_v61 = vpop.permute.xlu1 %3863 }
 0x5a8   : > { %3866 = vst [vmem:[%s6478_s9] sm:$0xff] %v3864_v61 }
 0x5a9 PF: > { %p18_p11 = scmp.ge.s32.totalorder %s5196_s14, 4   ;;  %s6479_s11 = smov %s5116_s12 }
 0x5aa   : > { %s6480_s12 = smov %s5205_s17  ;;  %s6481_s13 = smov %s5196_s14 }
 0x5ab   :  { %20 = sbr.rel (!%p18_p11) target bundleno = 5 (0x5), region = 121 }

</bundles_post_ra>
